<compile_context>
chip_gen: v6e
topology: v6e:2x2x1
jax: 0.10.0
libtpu: 0.0.40
codegen_flags: <defaults>
</compile_context>

<pallas_src>
import functools
import math

import jax
import jax.numpy as jnp
from jax.experimental import pallas as pl
from jax.experimental.pallas import tpu as pltpu


def _erf_poly(x):
    """Abramowitz & Stegun 7.1.26 erf approximation, |err| < 1.5e-7 (f32)."""
    a1, a2, a3, a4, a5 = 0.254829592, -0.284496736, 1.421413741, -1.453152027, 1.061405429
    p = 0.3275911
    ax = jnp.abs(x)
    t = 1.0 / (1.0 + p * ax)
    poly = ((((a5 * t + a4) * t + a3) * t + a2) * t + a1) * t
    y = 1.0 - poly * jnp.exp(-ax * ax)
    return jnp.where(x >= 0.0, y, -y)


def _gelu_exact(x):
    # nn.GELU() (erf form), erf realized with the Mosaic-safe polynomial above.
    return 0.5 * x * (1.0 + _erf_poly(x * (1.0 / math.sqrt(2.0))))


def qnet_kernel(x_ref, we1_ref, b1t_ref, w2_ref, b2_ref, wd_ref, bd_ref, out_ref):
    """One block of TB batch elements per grid step.

    x_ref:  (TB*L, DF)   pre-flattened, pre-cast input rows (cls rows are zero)
    we1_ref:(DF, E)      folded patch-embed∘fc1 weight (compute dtype)
    b1t_ref:(TB*L, E)    folded bias (cls/fc1), pre-tiled per group (f32)
    w2_ref: (E, E)       fc2 weight (compute dtype)
    b2_ref: (1, E)       fc2 bias (f32)
    wd_ref: (1, E)       gamma ⊙ decoder weight (f32)
    bd_ref: (1, 1) SMEM  beta·decoder weight + decoder bias (f32 scalar)
    out_ref:(TB, 1, LP)  lane-padded softmax weights (first L lanes valid)
    """
    M, _ = x_ref.shape
    E = w2_ref.shape[0]
    TB = out_ref.shape[0]
    LP = out_ref.shape[2]
    L = M // TB
    cd = we1_ref.dtype                                  # compute dtype (pre-cast)

    # ---- fused patch-embed + fc1: one (M, DF)@(DF, E) MXU matmul, f32 accum ----
    h = jnp.dot(x_ref[...], we1_ref[...],
                preferred_element_type=jnp.float32) + b1t_ref[...]      # (M, E)
    h = _gelu_exact(h)

    # ---- fc2 ----
    y = jnp.dot(h.astype(cd), w2_ref[...],
                preferred_element_type=jnp.float32) + b2_ref[...]       # (M, E)

    # ---- LayerNorm(embed_dim), eps = 1e-6; affine folded into the decoder ----
    mu = jnp.mean(y, axis=1, keepdims=True)
    var = jnp.mean((y - mu) ** 2, axis=1, keepdims=True)
    yn = (y - mu) * jax.lax.rsqrt(var + 1e-6)                           # (M, E)

    # ---- decoder_pred: Linear(E, 1) as a VPU reduce (MXU has huge slack here) ----
    yn3 = yn.reshape(TB, L, E)                                          # sublane split
    bd = bd_ref[0, 0]                                                   # SMEM scalar
    pred_col = jnp.sum(yn3 * wd_ref[...], axis=2, keepdims=True) + bd   # (TB, L, 1)

    # ---- rank-weighted softmax, computed directly at lane width LP (>=128).
    # Padded lanes j >= L carry zeros and are masked out; the (TB, L, LP)
    # temporaries use the same vregs the old (TB, L, 8) ones did.
    i2 = jax.lax.broadcasted_iota(jnp.int32, (L, LP), 0)[None]          # (1, L, LP)
    j2 = jax.lax.broadcasted_iota(jnp.int32, (L, LP), 1)[None]          # (1, L, LP)
    eye = i2 == j2
    valid_j = j2 < L

    # bit-exact lane-oriented copy of pred (select + zero-sum; no tie hazard)
    pred_row = jnp.sum(jnp.where(eye, pred_col, 0.0),
                       axis=1, keepdims=True)                           # (TB, 1, LP)

    # rank[t, i] = #{ j : pred[j] sorts strictly before pred[i] } (stable ties)
    less = valid_j & (~eye) & ((pred_row < pred_col) |
                               ((pred_row == pred_col) & (j2 < i2)))    # (TB, L, LP)
    rank = jnp.sum(less.astype(jnp.int32), axis=2, keepdims=True)       # (TB, L, 1)

    # sorted indices (torch.sort(pred)[1]): sind[k] = i with rank[i] == k
    hit = rank == j2                                                    # (TB, L, LP)
    sind = jnp.sum(jnp.where(hit, i2, 0), axis=1, keepdims=True)        # (TB, 1, LP)

    soft = pred_row * jnp.log(sind.astype(jnp.float32) + 1.0)           # (TB, 1, LP)
    lane_valid = valid_j[:, :1, :]                                      # (1, 1, LP)
    soft = jnp.where(lane_valid, soft, -jnp.inf)
    mx = jnp.max(soft, axis=2, keepdims=True)
    e = jnp.exp(soft - mx)
    w = e / jnp.sum(e, axis=2, keepdims=True)            # softmax over valid lanes
    out_ref[...] = w.astype(out_ref.dtype)               # full-lane unmasked stores


def qnet_forward(x, params, *, block_b=16, compute_dtype=jnp.float32):
    """x: (B, N, D, F) float32 -> (B, N+1) float32 portfolio weights.

    block_b (TB): batch elements per grid step.  Pick TB so TB*L is a multiple
      of 128 (lane/sublane aligned x block).  v5e/v6e (128 MiB VMEM, 1 TC):
      target an x block of ~1-4 MiB with >= 4-8 grid steps for production B.
      v7x (64 MiB VMEM, 32 MiB scoped default, 2 TCs): keep the grid length a
      multiple of 2 and cap TB so 2x the x block + resident weights stays well
      under ~32 MiB.
    compute_dtype: jnp.bfloat16 halves x DMA bytes and feeds native bf16 MXU
      operands (f32 accumulation) on v6e/v7x; f32 (default) is the exact path.
      v7x MXU has no int operands, so bf16 (not int8) is the quantized path.
    """
    B, N, D, F = x.shape
    DF = D * F
    L = N + 1
    E = params["w1"].shape[0]
    LP = max(128, ((L + 127) // 128) * 128)     # lane-padded output width

    TB = int(min(block_b, B))
    nb = pl.cdiv(B, TB)
    B_pad = nb * TB
    M = TB * L                                  # rows per grid step (128 for demo)

    # ---- host-side folds (one-time, f32) -----------------------------------
    # patch-embed ∘ fc1:  h = GELU(x @ (w_e @ w1) + ([cls; b_e] @ w1 + b1))
    w_e1 = params["w_e"] @ params["w1"]                                  # (DF, E)
    baug = jnp.concatenate(
        [params["cls"], jnp.broadcast_to(params["b_e"], (N, E))], axis=0)  # (L, E)
    b_aug1 = baug @ params["w1"] + params["b1"]                          # (L, E)
    b1t = jnp.tile(b_aug1, (TB, 1)).astype(jnp.float32)                  # (TB*L, E)
    # LayerNorm affine ∘ decoder: pred = yn_raw · (gamma ⊙ w_dec) + (beta·w_dec + b_dec)
    wd_f = (params["gamma"] * params["w_dec"]).astype(jnp.float32)       # (1, E)
    bd_f = (params["beta"] @ params["w_dec"].T
            + params["b_dec"]).reshape(1, 1).astype(jnp.float32)         # (1, 1)

    # ---- operand prep: pre-flattened x, pre-cast matmul operands -----------
    x_flat = x.reshape(B, N, DF)
    # row 0 of every batch element is a zero row reserved for the cls token
    x_aug = jnp.concatenate([jnp.zeros((B, 1, DF), x_flat.dtype), x_flat], axis=1)
    if B_pad != B:
        x_aug = jnp.concatenate(
            [x_aug, jnp.zeros((B_pad - B, L, DF), x_flat.dtype)], axis=0)
    x2d = x_aug.reshape(B_pad * L, DF).astype(compute_dtype)             # (B_pad*L, DF)
    w_e1_c = w_e1.astype(compute_dtype)
    w2_c = params["w2"].astype(compute_dtype)
    b2_f = params["b2"].astype(jnp.float32)

    grid_spec = pltpu.PrefetchScalarGridSpec(
        num_scalar_prefetch=0,
        grid=(nb,),
        in_specs=[
            pl.BlockSpec((M, DF), lambda b: (b, 0)),      # x (TB*L rows / step)
            pl.BlockSpec((DF, E), lambda b: (0, 0)),      # folded w_e @ w1
            pl.BlockSpec((M, E), lambda b: (0, 0)),       # folded+tiled bias
            pl.BlockSpec((E, E), lambda b: (0, 0)),       # w2
            pl.BlockSpec((1, E), lambda b: (0, 0)),       # b2
            pl.BlockSpec((1, E), lambda b: (0, 0)),       # gamma ⊙ w_dec
            pl.BlockSpec(memory_space=pltpu.MemorySpace.SMEM),   # folded decoder bias
        ],
        out_specs=pl.BlockSpec((TB, 1, LP), lambda b: (b, 0, 0)),
    )

    out = pl.pallas_call(
        qnet_kernel,
        out_shape=jax.ShapeDtypeStruct((B_pad, 1, LP), jnp.float32),
        grid_spec=grid_spec,
        compiler_params=pltpu.CompilerParams(
            dimension_semantics=("parallel",)),
    )(x2d, w_e1_c, b1t, w2_c, b2_f, wd_f, bd_f)

    return out[:B, 0, :L]  # (B, L)


def init_params(key, DF, E):
    """Deterministic synthetic init mirroring QNet._init_weights (orthogonal Linear,
    bias 1e-6, LayerNorm weight=1/bias=0, cls ~ trunc_normal(std=0.02))."""
    ks = jax.random.split(key, 5)
    orth = jax.nn.initializers.orthogonal()
    return dict(
        w_e=orth(ks[0], (DF, E), jnp.float32),
        b_e=jnp.full((1, E), 1e-6, jnp.float32),
        cls=0.02 * jax.random.truncated_normal(ks[1], -2.0, 2.0, (1, E), jnp.float32),
        w1=orth(ks[2], (E, E), jnp.float32),
        b1=jnp.full((1, E), 1e-6, jnp.float32),
        w2=orth(ks[3], (E, E), jnp.float32),
        b2=jnp.full((1, E), 1e-6, jnp.float32),
        gamma=jnp.ones((1, E), jnp.float32),
        beta=jnp.zeros((1, E), jnp.float32),
        w_dec=orth(ks[4], (1, E), jnp.float32),
        b_dec=jnp.full((1, 1), 1e-6, jnp.float32),
    )


def qnet_reference(x, params):
    """Pure-JAX reference of the torch forward() for verification (unfused)."""
    B, N, D, F = x.shape
    E = params["w1"].shape[0]
    xf = x.reshape(B, N, D * F)
    tok = xf @ params["w_e"] + params["b_e"]                              # (B, N, E)
    cls = jnp.broadcast_to(params["cls"][None], (B, 1, E))
    h = jnp.concatenate([cls, tok], axis=1)                               # (B, L, E)
    h = jax.nn.gelu(h @ params["w1"] + params["b1"], approximate=False)
    y = h @ params["w2"] + params["b2"]
    mu = y.mean(-1, keepdims=True)
    var = ((y - mu) ** 2).mean(-1, keepdims=True)
    yn = (y - mu) / jnp.sqrt(var + 1e-6) * params["gamma"] + params["beta"]
    pred = (yn @ params["w_dec"].T + params["b_dec"])[..., 0]             # (B, L)
    idx = jnp.argsort(pred, axis=-1)
    soft = pred * jnp.log(idx.astype(jnp.float32) + 1.0)
    return jax.nn.softmax(soft, axis=-1)


if __name__ == "__main__":
    # shapes consistent with the module: num_stocks=7 (L=8), feature_size=(8,16),
    # embed_dim=32, depth=1; batch=32 so each grid step packs TB=16 elements
    # (TB*L = 128 matmul rows / x block 128x128) and the parallel grid has
    # 2 steps (v7x: both TensorCores get work).
    B, N, D, F, E = 32, 7, 8, 16, 32
    key = jax.random.PRNGKey(0)
    kx, kp = jax.random.split(key)
    x = jax.random.normal(kx, (B, N, D, F), jnp.float32)
    params = init_params(kp, D * F, E)

    # exact (f32-MXU) path, checked against the pure-JAX reference
    out = qnet_forward(x, params, block_b=16)
    out = jax.block_until_ready(out)
    assert out.shape == (B, N + 1), out.shape
    ref = qnet_reference(x, params)
    assert bool(jnp.allclose(out, ref, rtol=2e-3, atol=2e-4)), "mismatch vs reference"

    # bf16-operand MXU path (recommended on v6e/v7x); sanity-check softmax output
    # (near-ties in pred can legitimately reorder ranks under bf16, so only
    #  structural properties are asserted here).
    out_bf16 = jax.block_until_ready(
        qnet_forward(x, params, block_b=16, compute_dtype=jnp.bfloat16))
    assert out_bf16.shape == (B, N + 1)
    assert bool(jnp.all(jnp.isfinite(out_bf16)))
    assert bool(jnp.allclose(out_bf16.sum(axis=-1), 1.0, atol=1e-3))

    print("KERNEL_OK")
</pallas_src>

<mosaic_0001>
module attributes {stable_mosaic.version = 11 : i64} {
  func.func @qnet_kernel(%arg0: i32, %arg1: memref<128x128xf32, #tpu.memory_space<vmem>>, %arg2: memref<128x32xf32, #tpu.memory_space<vmem>>, %arg3: memref<128x32xf32, #tpu.memory_space<vmem>>, %arg4: memref<32x32xf32, #tpu.memory_space<vmem>>, %arg5: memref<1x32xf32, #tpu.memory_space<vmem>>, %arg6: memref<1x32xf32, #tpu.memory_space<vmem>>, %arg7: memref<1x1xf32, #tpu.memory_space<smem>>, %arg8: memref<16x1x128xf32, #tpu.memory_space<vmem>>) attributes {dimension_semantics = [#tpu.dimension_semantics<parallel>], iteration_bounds = array<i64: 2>, scalar_prefetch = 0 : i64, scratch_operands = 0 : i64, tpu.core_type = #tpu.core_type<tc>, window_params = [{transform_indices = @transform_0, window_bounds = array<i64: 128, 128>}, {pipeline_mode = #tpu.pipeline_mode<synchronous>, transform_indices = @transform_1, window_bounds = array<i64: 128, 32>}, {pipeline_mode = #tpu.pipeline_mode<synchronous>, transform_indices = @transform_2, window_bounds = array<i64: 128, 32>}, {pipeline_mode = #tpu.pipeline_mode<synchronous>, transform_indices = @transform_3, window_bounds = array<i64: 32, 32>}, {pipeline_mode = #tpu.pipeline_mode<synchronous>, transform_indices = @transform_4, window_bounds = array<i64: 1, 32>}, {pipeline_mode = #tpu.pipeline_mode<synchronous>, transform_indices = @transform_5, window_bounds = array<i64: 1, 32>}, {transform_indices = @transform_6, window_bounds = array<i64: 1, 1>}, {transform_indices = @transform_7, window_bounds = array<i64: 16, 1, 128>}]} {
    %c0 = arith.constant 0 : index
    %c0_0 = arith.constant 0 : index
    %0 = vector.load %arg1[%c0, %c0_0] : memref<128x128xf32, #tpu.memory_space<vmem>>, vector<128x128xf32>
    %c0_1 = arith.constant 0 : index
    %c0_2 = arith.constant 0 : index
    %1 = vector.load %arg2[%c0_1, %c0_2] : memref<128x32xf32, #tpu.memory_space<vmem>>, vector<128x32xf32>
    %cst = arith.constant dense<0.000000e+00> : vector<128x32xf32>
    %2 = tpu.matmul %0, %1, %cst {dimension_numbers = #tpu.dot_dimension_numbers<[1], [0], [0], [1], [0, 0, 1, 1], [], []>} : vector<128x128xf32>, vector<128x32xf32>, vector<128x32xf32> -> vector<128x32xf32>
    %c0_3 = arith.constant 0 : index
    %c0_4 = arith.constant 0 : index
    %3 = vector.load %arg3[%c0_3, %c0_4] : memref<128x32xf32, #tpu.memory_space<vmem>>, vector<128x32xf32>
    %4 = arith.addf %2, %3 : vector<128x32xf32>
    %cst_5 = arith.constant 5.000000e-01 : f32
    %5 = vector.broadcast %cst_5 : f32 to vector<128x32xf32>
    %6 = arith.mulf %5, %4 : vector<128x32xf32>
    %cst_6 = arith.constant 0.707106769 : f32
    %7 = vector.broadcast %cst_6 : f32 to vector<128x32xf32>
    %8 = arith.mulf %4, %7 : vector<128x32xf32>
    %9 = math.absf %8 : vector<128x32xf32>
    %cst_7 = arith.constant 0.327591091 : f32
    %10 = vector.broadcast %cst_7 : f32 to vector<128x32xf32>
    %11 = arith.mulf %10, %9 : vector<128x32xf32>
    %cst_8 = arith.constant 1.000000e+00 : f32
    %12 = vector.broadcast %cst_8 : f32 to vector<128x32xf32>
    %13 = arith.addf %12, %11 : vector<128x32xf32>
    %cst_9 = arith.constant 1.000000e+00 : f32
    %14 = vector.broadcast %cst_9 : f32 to vector<128x32xf32>
    %15 = arith.divf %14, %13 : vector<128x32xf32>
    %cst_10 = arith.constant 1.06140542 : f32
    %16 = vector.broadcast %cst_10 : f32 to vector<128x32xf32>
    %17 = arith.mulf %16, %15 : vector<128x32xf32>
    %cst_11 = arith.constant -1.45315206 : f32
    %18 = vector.broadcast %cst_11 : f32 to vector<128x32xf32>
    %19 = arith.addf %17, %18 : vector<128x32xf32>
    %20 = arith.mulf %19, %15 : vector<128x32xf32>
    %cst_12 = arith.constant 1.42141378 : f32
    %21 = vector.broadcast %cst_12 : f32 to vector<128x32xf32>
    %22 = arith.addf %20, %21 : vector<128x32xf32>
    %23 = arith.mulf %22, %15 : vector<128x32xf32>
    %cst_13 = arith.constant -0.284496725 : f32
    %24 = vector.broadcast %cst_13 : f32 to vector<128x32xf32>
    %25 = arith.addf %23, %24 : vector<128x32xf32>
    %26 = arith.mulf %25, %15 : vector<128x32xf32>
    %cst_14 = arith.constant 0.254829586 : f32
    %27 = vector.broadcast %cst_14 : f32 to vector<128x32xf32>
    %28 = arith.addf %26, %27 : vector<128x32xf32>
    %29 = arith.mulf %28, %15 : vector<128x32xf32>
    %cst_15 = arith.constant 0.000000e+00 : f32
    %30 = vector.broadcast %cst_15 : f32 to vector<128x32xf32>
    %31 = arith.subf %30, %9 : vector<128x32xf32>
    %32 = arith.mulf %31, %9 : vector<128x32xf32>
    %33 = math.exp %32 : vector<128x32xf32>
    %34 = arith.mulf %29, %33 : vector<128x32xf32>
    %cst_16 = arith.constant 1.000000e+00 : f32
    %35 = vector.broadcast %cst_16 : f32 to vector<128x32xf32>
    %36 = arith.subf %35, %34 : vector<128x32xf32>
    %cst_17 = arith.constant 0.000000e+00 : f32
    %37 = vector.broadcast %cst_17 : f32 to vector<128x32xf32>
    %38 = arith.cmpf oge, %8, %37 : vector<128x32xf32>
    %cst_18 = arith.constant 0.000000e+00 : f32
    %39 = vector.broadcast %cst_18 : f32 to vector<128x32xf32>
    %40 = arith.subf %39, %36 : vector<128x32xf32>
    %41 = arith.select %38, %36, %40 : vector<128x32xi1>, vector<128x32xf32>
    %cst_19 = arith.constant 1.000000e+00 : f32
    %42 = vector.broadcast %cst_19 : f32 to vector<128x32xf32>
    %43 = arith.addf %42, %41 : vector<128x32xf32>
    %44 = arith.mulf %6, %43 : vector<128x32xf32>
    %c0_20 = arith.constant 0 : index
    %c0_21 = arith.constant 0 : index
    %45 = vector.load %arg4[%c0_20, %c0_21] : memref<32x32xf32, #tpu.memory_space<vmem>>, vector<32x32xf32>
    %cst_22 = arith.constant dense<0.000000e+00> : vector<128x32xf32>
    %46 = tpu.matmul %44, %45, %cst_22 {dimension_numbers = #tpu.dot_dimension_numbers<[1], [0], [0], [1], [0, 0, 1, 1], [], []>} : vector<128x32xf32>, vector<32x32xf32>, vector<128x32xf32> -> vector<128x32xf32>
    %c0_23 = arith.constant 0 : index
    %c0_24 = arith.constant 0 : index
    %47 = vector.load %arg5[%c0_23, %c0_24] : memref<1x32xf32, #tpu.memory_space<vmem>>, vector<1x32xf32>
    %48 = vector.broadcast %47 : vector<1x32xf32> to vector<128x32xf32>
    %49 = arith.addf %46, %48 : vector<128x32xf32>
    %cst_25 = arith.constant dense<0.000000e+00> : vector<128xf32>
    %50 = vector.multi_reduction <add>, %49, %cst_25 [1] : vector<128x32xf32> to vector<128xf32>
    %51 = vector.shape_cast %50 : vector<128xf32> to vector<128x1xf32>
    %cst_26 = arith.constant 3.200000e+01 : f32
    %52 = vector.broadcast %cst_26 : f32 to vector<128x1xf32>
    %53 = arith.divf %51, %52 : vector<128x1xf32>
    %54 = vector.broadcast %53 : vector<128x1xf32> to vector<128x32xf32>
    %55 = arith.subf %49, %54 : vector<128x32xf32>
    %56 = arith.mulf %55, %55 : vector<128x32xf32>
    %cst_27 = arith.constant dense<0.000000e+00> : vector<128xf32>
    %57 = vector.multi_reduction <add>, %56, %cst_27 [1] : vector<128x32xf32> to vector<128xf32>
    %58 = vector.shape_cast %57 : vector<128xf32> to vector<128x1xf32>
    %cst_28 = arith.constant 3.200000e+01 : f32
    %59 = vector.broadcast %cst_28 : f32 to vector<128x1xf32>
    %60 = arith.divf %58, %59 : vector<128x1xf32>
    %61 = vector.broadcast %53 : vector<128x1xf32> to vector<128x32xf32>
    %62 = arith.subf %49, %61 : vector<128x32xf32>
    %cst_29 = arith.constant 9.99999997E-7 : f32
    %63 = vector.broadcast %cst_29 : f32 to vector<128x1xf32>
    %64 = arith.addf %60, %63 : vector<128x1xf32>
    %65 = math.rsqrt %64 : vector<128x1xf32>
    %66 = vector.broadcast %65 : vector<128x1xf32> to vector<128x32xf32>
    %67 = arith.mulf %62, %66 : vector<128x32xf32>
    %68 = vector.shape_cast %67 : vector<128x32xf32> to vector<16x8x32xf32>
    %c0_30 = arith.constant 0 : index
    %c0_31 = arith.constant 0 : index
    %69 = memref.load %arg7[%c0_30, %c0_31] : memref<1x1xf32, #tpu.memory_space<smem>>
    %c0_32 = arith.constant 0 : index
    %c0_33 = arith.constant 0 : index
    %70 = vector.load %arg6[%c0_32, %c0_33] : memref<1x32xf32, #tpu.memory_space<vmem>>, vector<1x32xf32>
    %71 = vector.shape_cast %70 : vector<1x32xf32> to vector<1x1x32xf32>
    %72 = vector.broadcast %71 : vector<1x1x32xf32> to vector<16x8x32xf32>
    %73 = arith.mulf %68, %72 : vector<16x8x32xf32>
    %cst_34 = arith.constant dense<0.000000e+00> : vector<16x8xf32>
    %74 = vector.multi_reduction <add>, %73, %cst_34 [2] : vector<16x8x32xf32> to vector<16x8xf32>
    %75 = vector.shape_cast %74 : vector<16x8xf32> to vector<16x8x1xf32>
    %76 = vector.broadcast %69 : f32 to vector<16x8x1xf32>
    %77 = arith.addf %75, %76 : vector<16x8x1xf32>
    %78 = tpu.iota {dimensions = array<i32: 0>} : vector<8x128xi32>
    %79 = vector.shape_cast %78 : vector<8x128xi32> to vector<1x8x128xi32>
    %80 = tpu.iota {dimensions = array<i32: 1>} : vector<8x128xi32>
    %81 = vector.shape_cast %80 : vector<8x128xi32> to vector<1x8x128xi32>
    %82 = arith.cmpi eq, %79, %81 : vector<1x8x128xi32>
    %c8_i32 = arith.constant 8 : i32
    %83 = vector.broadcast %c8_i32 : i32 to vector<1x8x128xi32>
    %84 = arith.cmpi slt, %81, %83 : vector<1x8x128xi32>
    %cst_35 = arith.constant 0.000000e+00 : f32
    %85 = vector.shape_cast %82 : vector<1x8x128xi1> to vector<1x8x128xi1>
    %86 = vector.broadcast %85 : vector<1x8x128xi1> to vector<16x8x128xi1>
    %87 = vector.shape_cast %77 : vector<16x8x1xf32> to vector<16x8x1xf32>
    %88 = vector.broadcast %87 : vector<16x8x1xf32> to vector<16x8x128xf32>
    %89 = vector.broadcast %cst_35 : f32 to vector<16x8x128xf32>
    %90 = arith.select %86, %88, %89 : vector<16x8x128xi1>, vector<16x8x128xf32>
    %cst_36 = arith.constant dense<0.000000e+00> : vector<16x128xf32>
    %91 = vector.multi_reduction <add>, %90, %cst_36 [1] : vector<16x8x128xf32> to vector<16x128xf32>
    %92 = vector.shape_cast %91 : vector<16x128xf32> to vector<16x1x128xf32>
    %cst_37 = arith.constant dense<true> : vector<1x8x128xi1>
    %93 = arith.xori %82, %cst_37 : vector<1x8x128xi1>
    %94 = arith.andi %84, %93 : vector<1x8x128xi1>
    %95 = vector.broadcast %92 : vector<16x1x128xf32> to vector<16x8x128xf32>
    %96 = vector.broadcast %77 : vector<16x8x1xf32> to vector<16x8x128xf32>
    %97 = arith.cmpf olt, %95, %96 : vector<16x8x128xf32>
    %98 = vector.broadcast %92 : vector<16x1x128xf32> to vector<16x8x128xf32>
    %99 = vector.broadcast %77 : vector<16x8x1xf32> to vector<16x8x128xf32>
    %100 = arith.cmpf oeq, %98, %99 : vector<16x8x128xf32>
    %101 = arith.cmpi slt, %81, %79 : vector<1x8x128xi32>
    %102 = vector.broadcast %101 : vector<1x8x128xi1> to vector<16x8x128xi1>
    %103 = arith.andi %100, %102 : vector<16x8x128xi1>
    %104 = arith.ori %97, %103 : vector<16x8x128xi1>
    %105 = vector.broadcast %94 : vector<1x8x128xi1> to vector<16x8x128xi1>
    %106 = arith.andi %105, %104 : vector<16x8x128xi1>
    %107 = arith.extui %106 : vector<16x8x128xi1> to vector<16x8x128xi32>
    %cst_38 = arith.constant dense<0> : vector<16x8xi32>
    %108 = vector.multi_reduction <add>, %107, %cst_38 [2] : vector<16x8x128xi32> to vector<16x8xi32>
    %109 = vector.shape_cast %108 : vector<16x8xi32> to vector<16x8x1xi32>
    %110 = vector.broadcast %109 : vector<16x8x1xi32> to vector<16x8x128xi32>
    %111 = vector.broadcast %81 : vector<1x8x128xi32> to vector<16x8x128xi32>
    %112 = arith.cmpi eq, %110, %111 : vector<16x8x128xi32>
    %c0_i32 = arith.constant 0 : i32
    %113 = vector.shape_cast %79 : vector<1x8x128xi32> to vector<1x8x128xi32>
    %114 = vector.broadcast %113 : vector<1x8x128xi32> to vector<16x8x128xi32>
    %115 = vector.broadcast %c0_i32 : i32 to vector<16x8x128xi32>
    %116 = arith.select %112, %114, %115 : vector<16x8x128xi1>, vector<16x8x128xi32>
    %cst_39 = arith.constant dense<0> : vector<16x128xi32>
    %117 = vector.multi_reduction <add>, %116, %cst_39 [1] : vector<16x8x128xi32> to vector<16x128xi32>
    %118 = vector.shape_cast %117 : vector<16x128xi32> to vector<16x1x128xi32>
    %119 = arith.sitofp %118 : vector<16x1x128xi32> to vector<16x1x128xf32>
    %cst_40 = arith.constant 1.000000e+00 : f32
    %120 = vector.broadcast %cst_40 : f32 to vector<16x1x128xf32>
    %121 = arith.addf %119, %120 : vector<16x1x128xf32>
    %122 = math.log %121 : vector<16x1x128xf32>
    %123 = arith.mulf %92, %122 : vector<16x1x128xf32>
    %124 = vector.extract_strided_slice %84 {offsets = [0, 0, 0], sizes = [1, 1, 128], strides = [1, 1, 1]} : vector<1x8x128xi1> to vector<1x1x128xi1>
    %cst_41 = arith.constant 0xFF800000 : f32
    %125 = vector.shape_cast %124 : vector<1x1x128xi1> to vector<1x1x128xi1>
    %126 = vector.broadcast %125 : vector<1x1x128xi1> to vector<16x1x128xi1>
    %127 = vector.broadcast %cst_41 : f32 to vector<16x1x128xf32>
    %128 = arith.select %126, %123, %127 : vector<16x1x128xi1>, vector<16x1x128xf32>
    %cst_42 = arith.constant dense<0xFF800000> : vector<16x1xf32>
    %129 = vector.multi_reduction <maximumf>, %128, %cst_42 [2] : vector<16x1x128xf32> to vector<16x1xf32>
    %130 = vector.shape_cast %129 : vector<16x1xf32> to vector<16x1x1xf32>
    %131 = vector.broadcast %130 : vector<16x1x1xf32> to vector<16x1x128xf32>
    %132 = arith.subf %128, %131 : vector<16x1x128xf32>
    %133 = math.exp %132 : vector<16x1x128xf32>
    %cst_43 = arith.constant dense<0.000000e+00> : vector<16x1xf32>
    %134 = vector.multi_reduction <add>, %133, %cst_43 [2] : vector<16x1x128xf32> to vector<16x1xf32>
    %135 = vector.shape_cast %134 : vector<16x1xf32> to vector<16x1x1xf32>
    %136 = vector.broadcast %135 : vector<16x1x1xf32> to vector<16x1x128xf32>
    %137 = arith.divf %133, %136 : vector<16x1x128xf32>
    %c0_44 = arith.constant 0 : index
    %c0_45 = arith.constant 0 : index
    %c0_46 = arith.constant 0 : index
    %138 = vector.load %arg8[%c0_44, %c0_45, %c0_46] : memref<16x1x128xf32, #tpu.memory_space<vmem>>, vector<16x1x128xf32>
    tpu.vector_store %arg8[%c0_44, %c0_45, %c0_46], %137 {strides = array<i32>} : memref<16x1x128xf32, #tpu.memory_space<vmem>>, vector<16x1x128xf32>,
    return
  }
  func.func @transform_0(%arg0: i32) -> (i32, i32) {
    %c0_i32 = arith.constant 0 : i32
    %c0_i32_0 = arith.constant 0 : i32
    return %arg0, %c0_i32 : i32, i32
  }
  func.func @transform_1(%arg0: i32) -> (i32, i32) {
    %c0_i32 = arith.constant 0 : i32
    %c0_i32_0 = arith.constant 0 : i32
    %c0_i32_1 = arith.constant 0 : i32
    return %c0_i32, %c0_i32_0 : i32, i32
  }
  func.func @transform_2(%arg0: i32) -> (i32, i32) {
    %c0_i32 = arith.constant 0 : i32
    %c0_i32_0 = arith.constant 0 : i32
    %c0_i32_1 = arith.constant 0 : i32
    return %c0_i32, %c0_i32_0 : i32, i32
  }
  func.func @transform_3(%arg0: i32) -> (i32, i32) {
    %c0_i32 = arith.constant 0 : i32
    %c0_i32_0 = arith.constant 0 : i32
    %c0_i32_1 = arith.constant 0 : i32
    return %c0_i32, %c0_i32_0 : i32, i32
  }
  func.func @transform_4(%arg0: i32) -> (i32, i32) {
    %c0_i32 = arith.constant 0 : i32
    %c0_i32_0 = arith.constant 0 : i32
    %c0_i32_1 = arith.constant 0 : i32
    return %c0_i32, %c0_i32_0 : i32, i32
  }
  func.func @transform_5(%arg0: i32) -> (i32, i32) {
    %c0_i32 = arith.constant 0 : i32
    %c0_i32_0 = arith.constant 0 : i32
    %c0_i32_1 = arith.constant 0 : i32
    return %c0_i32, %c0_i32_0 : i32, i32
  }
  func.func @transform_6(%arg0: i32) -> (i32, i32) {
    %c0_i32 = arith.constant 0 : i32
    %c0_i32_0 = arith.constant 0 : i32
    %c0_i32_1 = arith.constant 0 : i32
    return %c0_i32, %c0_i32_0 : i32, i32
  }
  func.func @transform_7(%arg0: i32) -> (i32, i32, i32) {
    %c0_i32 = arith.constant 0 : i32
    %c0_i32_0 = arith.constant 0 : i32
    %c0_i32_1 = arith.constant 0 : i32
    return %arg0, %c0_i32, %c0_i32_0 : i32, i32, i32
  }
}

</mosaic_0001>

<bundles_post_ra>
// kernel: tpu_custom_call.1
= control target key start
LH: loop header
LB: loop body
LE: loop exit
PB: predicated region body
PF: predicated region fallthrough
CT: control target
= control target key end

     0   :  { %s4419_s0 = inlined_call_operand.vmem [shape: f32[256,128], index: 0, kind: input, shape index: {}]   ;;  %s4420_s1 = inlined_call_operand.vmem [shape: f32[128,32], index: 1, kind: input, shape index: {}]   ;;  %s4421_s2 = inlined_call_operand.vmem [shape: f32[128,32], index: 2, kind: input, shape index: {}]   ;;  %s4422_s3 = inlined_call_operand.vmem [shape: f32[32,32], index: 3, kind: input, shape index: {}]   ;;  %s4423_s4 = inlined_call_operand.vmem [shape: f32[1,32], index: 4, kind: input, shape index: {}]   ;;  %s4424_s5 = inlined_call_operand.vmem [shape: f32[1,32], index: 5, kind: input, shape index: {}]   ;;  %s4425_s6 = inlined_call_operand.<no memory space> [shape: f32[1,1], index: 6, kind: input, shape index: {}]   ;;  %s4426_s7 = inlined_call_operand.hbm [shape: f32[32,1,128], index: 7, kind: output, shape index: {}]  }
   0x1   :  { %12 = sst [smem:[#allocation2]] %s4425_s6 }
   0x2   :  { %13 = vsyncpa [#allocation4], 0 }
   0x3   :  { %15 = vsyncpa [#allocation4 + $0x1], 0  ;;  %s2802_s26 = smov 0   ;;  %s2804_s27 = smov 0  }
   0x4   :  { %s2806_s28 = smov 0   ;;  %s2808_s29 = smov 0  }
   0x5 LB: > { %s2823_s6 = sadd.s32 4294967295, %s2752_s29   ;;  %s2286_s30 = sadd.s32 4294967294, %s2752_s29   ;;  %s2752_s29 = sphi %s2808_s29, %s4508_s29   ;;  %s2748_s28 = sphi %s2806_s28, %s4507_s28   ;;  %s2744_s27 = sphi %s2804_s27, %s4506_s27   ;;  %s2740_s26 = sphi %s2802_s26, %s4505_s26  }
   0x6   : > { %s2827_s8 = sadd.s32 1, %s2752_s29   ;;  %s180_s9 = sadd.s32 1, %s2748_s28 }
   0x7   : > { %s177_s10 = ssub.s32 %s2752_s29, %s2827_s8  ;;  %p190_p0 = scmp.ne.s32.totalorder %s2748_s28, %s2744_s27 }
   0x8   : > { %p178_p1 = scmp.eq.s32.totalorder %s177_s10, 0  ;;  %p191_p2 = scmp.eq.s32.totalorder %s2823_s6, 1 }
   0x9   : > { %p196_p3 = scmp.ne.s32.totalorder %s2744_s27, %s2740_s26  ;;  %p197_p4 = scmp.eq.s32.totalorder %s2286_s30, 1 }
   0xa   : > { %s2838_s11 = scalar_select %p178_p1, %s2748_s28, %s180_s9  }
   0xb   : > { %p2840_p5 = por %p191_p2, %p190_p0  ;;  %p2844_p6 = por %p197_p4, %p196_p3 }
   0xc   : > { %p2289_p7 = scmp.ge.s32.totalorder %s2752_s29, 1  ;;  %p242_p8 = scmp.lt.s32.totalorder %s2752_s29, 3 }
   0xe   : > { %p243_p9 = pnand %p2289_p7, %p242_p8 }
  0x10   : > { %246 = sbr.rel (%p243_p9) target bundleno = 1589 (0x635), region = 48 }
  0x15   : > { %v312_v0 = vld [vmem:[%s4420_s1 + $0x78] sm:$0xff]  ;;  %v311_v1 = vld [vmem:[%s4420_s1 + $0x70] sm:$0xff]  ;;  %s2291_s18 = sshll.u32 %s2823_s6, 4  ;;  %v310_v2 = vld [vmem:[%s4420_s1 + $0x68] sm:$0xff]  ;;  %vm917_vm7 = vcmask 261120   ;;  %s1320_s21 = sld [smem:[#allocation2]] }
  0x16   : > { %2369 = vmatprep.subr.mxu0 %v312_v0  ;;  %p275_p10 = scmp.lt.s32.totalorder %s2291_s18, 31  ;;  %v309_v3 = vld [vmem:[%s4420_s1 + $0x60] sm:$0xff]  ;;  %v308_v4 = vld [vmem:[%s4420_s1 + $0x58] sm:$0xff]  ;;  %v307_v6 = vld [vmem:[%s4420_s1 + $0x50] sm:$0xff]  ;;  %s271_s22 = sand.u32 1, %s2744_s27  }
  0x17   : > { %2370 = vmatpush3.msra.mxu0 %v312_v0  ;;  %v306_v7 = vld [vmem:[%s4420_s1 + $0x48] sm:$0xff]  ;;  %v305_v8 = vld [vmem:[%s4420_s1 + $0x40] sm:$0xff]  ;;  %v304_v9 = vld [vmem:[%s4420_s1 + $0x38] sm:$0xff]  ;;  %s2316_s25 = sshll.u32 %s2823_s6, 8  ;;  %s4379_s15 = scalar_lea.sflag [#allocation4], %s271_s22 }
  0x18   : > { %2371 = vmatprep.subr.mxu0 %v311_v1  ;;  %s4510_s18 = smov (!%p275_p10, %s2291_s18), 31  ;;  %v303_v10 = vld [vmem:[%s4420_s1 + $0x30] sm:$0xff]  ;;  %v302_v11 = vld [vmem:[%s4420_s1 + $0x28] sm:$0xff]  ;;  %v301_v12 = vld [vmem:[%s4420_s1 + $0x20] sm:$0xff]  ;;  %s4371_s14 = scalar_lea.hbm %s4426_s7, %s2316_s25 }
  0x19   : > { %2372 = vmatpush3.msra.mxu0 %v311_v1  ;;  %s2292_s23 = sshll.u32 %s4510_s18, 3  ;;  %v300_v13 = vld [vmem:[%s4420_s1 + $0x18] sm:$0xff]  ;;  %v299_v14 = vld [vmem:[%s4420_s1 + $0x10] sm:$0xff]  ;;  %v298_v15 = vld [vmem:[%s4420_s1 + $0x8] sm:$0xff]  ;;  %s2756_s16 = smov [#allocation3]  }
  0x1a   : > { %2373 = vmatprep.subr.mxu0 %v310_v2  ;;  %s2869_s10 = scalar_lea.vmem %s4419_s0, %s2292_s23  ;;  %v297_v16 = vld [vmem:[%s4420_s1] sm:$0xff]  ;;  %v909_v32 = vld [vmem:[%s4422_s3 + $0x18] sm:$0xff]  ;;  %v908_v33 = vld [vmem:[%s4422_s3 + $0x10] sm:$0xff]  ;;  %s2290_s23 = sshll.u32 %s271_s22, 4 }
  0x1b   : > { %2374 = vmatpush3.msra.mxu0 %v310_v2  ;;  %v281_v5 = vld [vmem:[%s2869_s10] sm:$0xff]  ;;  %v282_v17 = vld [vmem:[%s2869_s10 + $0x8] sm:$0xff]  ;;  %v283_v18 = vld [vmem:[%s2869_s10 + $0x10] sm:$0xff]  ;;  %2425 = vmatprep.subr.mxu1 %v909_v32  ;;  %s4335_s24 = scalar_lea.vmem [#allocation3], %s2290_s23  ;;  %s2696_s17 = sshll.u32 %s2756_s16, 4  ;;  %s2697_s17 = int_to_ptr.vmem [resolvable:$false] %s2696_s17 }
  0x1c   : > { %2375 = vmatprep.subr.mxu0 %v309_v3  ;;  %2401 = vmatprep.mubr.f32.mxu0 %v281_v5  ;;  %v284_v19 = vld [vmem:[%s2869_s10 + $0x18] sm:$0xff]  ;;  %v285_v20 = vld [vmem:[%s2869_s10 + $0x20] sm:$0xff]  ;;  %v286_v21 = vld [vmem:[%s2869_s10 + $0x28] sm:$0xff]  ;;  %s2224_s30 = sshll.u32 %s4335_s24, 4  ;;  %s2698_s18 = scalar_lea.vmem %s2697_s17, 512  ;;  %s4373_s30 = int_to_ptr.vmem [resolvable:$true] %s2224_s30 }
  0x1d   : > { %2376 = vmatpush3.msra.mxu0 %v309_v3  ;;  %v287_v22 = vld [vmem:[%s2869_s10 + $0x30] sm:$0xff]  ;;  %v288_v23 = vld [vmem:[%s2869_s10 + $0x38] sm:$0xff]  ;;  %v289_v24 = vld [vmem:[%s2869_s10 + $0x40] sm:$0xff]  ;;  %2426 = vmatpush3.msra.mxu1 %v909_v32  ;;  %s2692_s6 = scalar_lea.vmem %s4373_s30, 256  ;;  %p2699_p0 = scmp.lt.s32.totalorder %s4373_s30, %s2697_s17 }
  0x1e   : > { %2377 = vmatprep.subr.mxu0 %v308_v4  ;;  %v290_v25 = vld [vmem:[%s2869_s10 + $0x48] sm:$0xff]  ;;  %v291_v26 = vld [vmem:[%s2869_s10 + $0x50] sm:$0xff]  ;;  %v292_v27 = vld [vmem:[%s2869_s10 + $0x58] sm:$0xff]  ;;  %2427 = vmatprep.subr.mxu1 %v908_v33  ;;  %p2693_p11 = scmp.ne.s32.totalorder %s4373_s30, %s2692_s6  ;;  %p2700_p1 = scmp.lt.s32.totalorder %s2698_s18, %s2692_s6 }
  0x1f   : > { %2378 = vmatpush3.msra.mxu0 %v308_v4  ;;  %v293_v28 = vld [vmem:[%s2869_s10 + $0x60] sm:$0xff]  ;;  %v294_v29 = vld [vmem:[%s2869_s10 + $0x68] sm:$0xff]  ;;  %v295_v30 = vld [vmem:[%s2869_s10 + $0x70] sm:$0xff]  ;;  %2428 = vmatpush3.msra.mxu1 %v908_v33 }
  0x20   : > { %2379 = vmatprep.subr.mxu0 %v307_v6  ;;  %v296_v31 = vld [vmem:[%s2869_s10 + $0x78] sm:$0xff]  ;;  %v907_v34 = vld [vmem:[%s4422_s3 + $0x8] sm:$0xff]  ;;  %v906_v35 = vld [vmem:[%s4422_s3] sm:$0xff]  ;;  %p2694_p12 = pnand %p2693_p11, %p2840_p5  ;;  %p2701_p2 = por %p2700_p1, %p2699_p0 }
  0x21   : > { %2380 = vmatpush3.msra.mxu0 %v307_v6  ;;  %2429 = vmatprep.subr.mxu1 %v907_v34  ;;  %v314_v36 = vld [vmem:[%s4421_s2 + $0x8] sm:$0xff]  ;;  %v316_v41 = vld [vmem:[%s4421_s2 + $0x18] sm:$0xff]  ;;  %v315_v44 = vld [vmem:[%s4421_s2 + $0x10] sm:$0xff] }
  0x22   : > { %2381 = vmatprep.subr.mxu0 %v306_v7  ;;  %2430 = vmatpush3.msra.mxu1 %v907_v34  ;;  %v318_v54 = vld [vmem:[%s4421_s2 + $0x28] sm:$0xff]  ;;  %v317_v56 = vld [vmem:[%s4421_s2 + $0x20] sm:$0xff]  ;;  %v320_v0 = vld [vmem:[%s4421_s2 + $0x38] sm:$0xff]  ;;  %p2695_p13 = pneg %p2694_p12 }
  0x23   : > { %2382 = vmatpush3.msra.mxu0 %v306_v7  ;;  %2431 = vmatprep.subr.mxu1 %v906_v35  ;;  %v322_v32 = vld [vmem:[%s4421_s2 + $0x48] sm:$0xff] }
  0x24   : > { %2383 = vmatprep.subr.mxu0 %v305_v8  ;;  %2432 = vmatpush3.msra.mxu1 %v906_v35  ;;  %p2702_p3 = pnand %p2701_p2, %p2695_p13 }
  0x25   : > { %2384 = vmatpush3.msra.mxu0 %v305_v8  ;;  %v319_v8 = vld [vmem:[%s4421_s2 + $0x30] sm:$0xff] }
  0x26   : > { %2385 = vmatprep.subr.mxu0 %v304_v9 }
  0x27   : > { %2386 = vmatpush3.msra.mxu0 %v304_v9 }
  0x28   : > { %2387 = vmatprep.subr.mxu0 %v303_v10 }
  0x29   : > { %2388 = vmatpush3.msra.mxu0 %v303_v10 }
  0x2a   : > { %2389 = vmatprep.subr.mxu0 %v302_v11 }
  0x2b   : > { %2390 = vmatpush3.msra.mxu0 %v302_v11 }
  0x2c   : > { %2391 = vmatprep.subr.mxu0 %v301_v12 }
  0x2d   : > { %2392 = vmatpush3.msra.mxu0 %v301_v12 }
  0x2e   : > { %2393 = vmatprep.subr.mxu0 %v300_v13 }
  0x2f   : > { %2394 = vmatpush3.msra.mxu0 %v300_v13 }
  0x30   : > { %2395 = vmatprep.subr.mxu0 %v299_v14 }
  0x31   : > { %2396 = vmatpush3.msra.mxu0 %v299_v14 }
  0x32   : > { %2397 = vmatprep.subr.mxu0 %v298_v15 }
  0x33   : > { %2398 = vmatpush3.msra.mxu0 %v298_v15 }
  0x34   : > { %2399 = vmatprep.subr.mxu0 %v297_v16 }
  0x35   : > { %2400 = vmatpush3.msra.mxu0 %v297_v16 }
  0x36   : > { %2402 = vmatmul.mubr.f32.vlgmr.msra.gmra.mxu0 %v282_v17 }
  0x37   : > { %2404 = vmatprep.mubr.f32.mxu0 %v283_v18 }
  0x3a   : > { %2405 = vmatmul.mubr.f32.gmra.mxu0 %v284_v19 }
  0x3b   : > { %2407 = vmatprep.mubr.f32.mxu0 %v285_v20 }
  0x3e   : > { %2408 = vmatmul.mubr.f32.gmra.mxu0 %v286_v21 }
  0x3f   : > { %2410 = vmatprep.mubr.f32.mxu0 %v287_v22  ;;  %v321_v22 = vld [vmem:[%s4421_s2 + $0x40] sm:$0xff] }
  0x42   : > { %2411 = vmatmul.mubr.f32.gmra.mxu0 %v288_v23 }
  0x43   : > { %2413 = vmatprep.mubr.f32.mxu0 %v289_v24 }
  0x46   : > { %2414 = vmatmul.mubr.f32.gmra.mxu0 %v290_v25 }
  0x47   : > { %2416 = vmatprep.mubr.f32.mxu0 %v291_v26 }
  0x4a   : > { %2417 = vmatmul.mubr.f32.gmra.mxu0 %v292_v27 }
  0x4b   : > { %2419 = vmatprep.mubr.f32.mxu0 %v293_v28  ;;  %v313_v28 = vld [vmem:[%s4421_s2] sm:$0xff] }
  0x4e   : > { %2420 = vmatmul.mubr.f32.gmra.mxu0 %v294_v29 }
  0x4f   : > { %2422 = vmatprep.mubr.f32.mxu0 %v295_v30 }
  0x52   : > { %2423 = vmatmul.mubr.f32.gmra.mxu0 %v296_v31 }
  0xf6   : > { %v2403_v37 = vpop.f32.mrf.mxu0 }
  0xf7   : > { %v2935_v38 = vadd.f32 %v2403_v37, %v314_v36 }
  0xf8   : > { %v2937_v39 = vpop.f32.mrf.mxu0 }
  0xf9   : > { %v2940_v40 = vmul.f32 0.70710677, %v2935_v38  ;;  %v3040_v37 = vadd.f32 %v2937_v39, %v313_v28  ;;  %v324_v39 = vld [vmem:[%s4421_s2 + $0x58] sm:$0xff] }
  0xfa   : > { %v2406_v42 = vpop.f32.mrf.mxu0 }
  0xfb   : > { %v2946_v43 = vand.u32 2147483647, %v2940_v40  ;;  %v2951_v45 = vadd.f32 %v2406_v42, %v316_v41  ;;  %vm827_vm0 = vcmp.ge.f32.partialorder %v2940_v40, 0.0  ;;  %v325_v40 = vld [vmem:[%s4421_s2 + $0x60] sm:$0xff] }
  0xfc   : > { %v405_v46 = vpop.f32.mrf.mxu0 }
  0xfd   : > { %v523_v47 = vmul.f32 0.3275911, %v2946_v43  ;;  %v2955_v48 = vmul.f32 0.70710677, %v2951_v45  ;;  %v2957_v49 = vadd.f32 %v405_v46, %v315_v44  ;;  %v731_v31 = vsub.f32 0.0, %v2946_v43 }
  0xfe   : > { %v2409_v50 = vpop.f32.mrf.mxu0 }
  0xff   : > { %v539_v51 = vadd.f32 1.0, %v523_v47  ;;  %v2960_v52 = vand.u32 2147483647, %v2955_v48  ;;  %v2963_v53 = vmul.f32 0.70710677, %v2957_v49  ;;  %v2975_v59 = vadd.f32 %v2409_v50, %v318_v54 }
 0x100   : > { %v415_v55 = vpop.f32.mrf.mxu0  ;;  %v747_v47 = vmul.f32 %v731_v31, %v2946_v43  ;;  %vm829_vm1 = vcmp.ge.f32.partialorder %v2955_v48, 0.0 }
 0x101   : > { %2500 = vrcp.f32 %v539_v51  ;;  %v525_v57 = vmul.f32 0.3275911, %v2960_v52  ;;  %v2973_v58 = vand.u32 2147483647, %v2963_v53  ;;  %v2977_v60 = vadd.f32 %v415_v55, %v317_v56 }
 0x102   : > { %v2981_v63 = vmul.f32 0.70710677, %v2975_v59  ;;  %v2412_v1 = vpop.f32.mrf.mxu0  ;;  %v3057_v56 = vmul.f32 0.70710677, %v3040_v37  ;;  %vm828_vm2 = vcmp.ge.f32.partialorder %v2963_v53, 0.0 }
 0x103   : > { %v541_v61 = vadd.f32 1.0, %v525_v57  ;;  %v524_v62 = vmul.f32 0.3275911, %v2973_v58  ;;  %v2990_v4 = vmul.f32 0.70710677, %v2977_v60  ;;  %v2992_v5 = vadd.f32 %v2412_v1, %v320_v0 }
 0x104   : > { %v2987_v3 = vand.u32 2147483647, %v2981_v63  ;;  %v425_v7 = vpop.f32.mrf.mxu0  ;;  %v733_v57 = vsub.f32 0.0, %v2960_v52  ;;  %v764_v1 = vmul.f32 1.442695, %v747_v47  ;;  %vm826_vm4 = vcmp.ge.f32.partialorder %v3057_v56, 0.0 }
 0x105   : > { %2502 = vrcp.f32 %v541_v61  ;;  %v540_v2 = vadd.f32 1.0, %v524_v62  ;;  %v2999_v9 = vand.u32 2147483647, %v2990_v4  ;;  %v3002_v11 = vmul.f32 0.70710677, %v2992_v5 }
 0x106   : > { %v527_v6 = vmul.f32 0.3275911, %v2987_v3  ;;  %v3005_v13 = vadd.f32 %v425_v7, %v319_v8  ;;  %v2415_v15 = vpop.f32.mrf.mxu0  ;;  %v732_v8 = vsub.f32 0.0, %v2973_v58  ;;  %vm830_vm3 = vcmp.ge.f32.partialorder %v2990_v4, 0.0 }
 0x107   : > { %2504 = vrcp.f32 %v540_v2  ;;  %v526_v12 = vmul.f32 0.3275911, %v2999_v9  ;;  %v3011_v17 = vand.u32 2147483647, %v3002_v11  ;;  %v3043_v44 = vadd.f32 %v2415_v15, %v322_v32 }
 0x108   : > { %v543_v10 = vadd.f32 1.0, %v527_v6  ;;  %v3014_v19 = vmul.f32 0.70710677, %v3005_v13  ;;  %v435_v21 = vpop.f32.mrf.mxu0  ;;  %v749_v15 = vmul.f32 %v733_v57, %v2960_v52  ;;  %vm831_vm5 = vcmp.ge.f32.partialorder %v2981_v63, 0.0 }
 0x109   : > { %v542_v18 = vadd.f32 1.0, %v526_v12  ;;  %v529_v24 = vmul.f32 0.3275911, %v3011_v17  ;;  %v3030_v29 = vadd.f32 %v435_v21, %v321_v22  ;;  %4440 = vst [vmem:[#allocation6_spill] sm:$0xff] %v3043_v44  ;;  %v3062_v62 = vmul.f32 0.70710677, %v3043_v44 }
 0x10a   : > { %2506 = vrcp.f32 %v543_v10  ;;  %v3025_v27 = vand.u32 2147483647, %v3014_v19  ;;  %v2418_v54 = vpop.f32.mrf.mxu0  ;;  %v506_v12 = vand.u32 2147483647, %v3057_v56  ;;  %v768_v28 = vmul.f32 1.442695, %v749_v15 }
 0x10b   : > { %2508 = vrcp.f32 %v542_v18  ;;  %v545_v35 = vadd.f32 1.0, %v529_v24  ;;  %v3046_v46 = vmul.f32 0.70710677, %v3030_v29  ;;  %v3068_v6 = vadd.f32 %v2418_v54, %v324_v39 }
 0x10c   : > { %v528_v41 = vmul.f32 0.3275911, %v3025_v27  ;;  %v730_v32 = vsub.f32 0.0, %v506_v12  ;;  %v735_v54 = vsub.f32 0.0, %v2987_v3  ;;  %vm832_vm6 = vcmp.ge.f32.partialorder %v3014_v19, 0.0 }
 0x10d   : > { %2510 = vrcp.f32 %v545_v35  ;;  %v3065_v0 = vand.u32 2147483647, %v3046_v46  ;;  %4441 = vst [vmem:[#allocation7_spill] sm:$0xff] %v3068_v6  ;;  %v3080_v24 = vmul.f32 0.70710677, %v3068_v6  ;;  %vm834_vm8 = vcmp.ge.f32.partialorder %v3046_v46, 0.0 }
 0x10e   : > { %v3007_v14 = vpop.eup %2500  ;;  %v544_v61 = vadd.f32 1.0, %v528_v41  ;;  %v746_v57 = vmul.f32 %v730_v32, %v506_v12  ;;  %vm833_vm9 = vcmp.ge.f32.partialorder %v3002_v11, 0.0  ;;  %vm835_vm10 = vcmp.ge.f32.partialorder %v3062_v62, 0.0 }
 0x10f   : > { %v587_v16 = vmul.f32 1.0614054, %v3007_v14  ;;  %v530_v21 = vmul.f32 0.3275911, %v3065_v0  ;;  %v3090_v41 = vand.u32 2147483647, %v3080_v24 }
 0x110   : > { %2512 = vrcp.f32 %v544_v61  ;;  %vm837_vm12 = vcmp.ge.f32.partialorder %v3080_v24, 0.0 }
 0x111   : > { %v603_v20 = vadd.f32 -1.4531521, %v587_v16  ;;  %2514 = vpow2.f32 %v764_v1  ;;  %v546_v35 = vadd.f32 1.0, %v530_v21  ;;  %v3096_v1 = vmul.f32 0.5, %v2935_v38 }
 0x112   : > { %v3019_v23 = vpop.eup %2502  ;;  %2516 = vpow2.f32 %v768_v28  ;;  %v3103_v21 = vmul.f32 0.5, %v3040_v37  ;;  %v3112_v28 = vmul.f32 0.5, %v2951_v45  ;;  %v737_v37 = vsub.f32 0.0, %v3011_v17 }
 0x113   : > { %v619_v25 = vmul.f32 %v3007_v14, %v603_v20  ;;  %v589_v26 = vmul.f32 1.0614054, %v3019_v23  ;;  %v3076_v20 = vand.u32 2147483647, %v3062_v62  ;;  %2518 = vrcp.f32 %v546_v35 }
 0x114   : > { %v3032_v30 = vpop.eup %2504 }
 0x115   : > { %v605_v33 = vadd.f32 -1.4531521, %v589_v26  ;;  %v588_v34 = vmul.f32 1.0614054, %v3032_v30  ;;  %v635_v36 = vadd.f32 1.4214138, %v619_v25  ;;  %v748_v26 = vmul.f32 %v732_v8, %v2973_v58 }
 0x117   : > { %v604_v42 = vadd.f32 -1.4531521, %v588_v34  ;;  %v3049_v50 = vpop.eup %2506  ;;  %v621_v51 = vmul.f32 %v3019_v23, %v605_v33  ;;  %v651_v55 = vmul.f32 %v3007_v14, %v635_v36  ;;  %v531_v34 = vmul.f32 0.3275911, %v3076_v20 }
 0x118   : > { %v591_v2 = vmul.f32 1.0614054, %v3049_v50  ;;  %v3073_v16 = vpop.eup %2508 }
 0x119   : > { %v620_v43 = vmul.f32 %v3032_v30, %v604_v42  ;;  %v637_v7 = vadd.f32 1.4214138, %v621_v51  ;;  %v667_v10 = vadd.f32 -0.28449672, %v651_v55  ;;  %v590_v31 = vmul.f32 1.0614054, %v3073_v16 }
 0x11a   : > { %v607_v22 = vadd.f32 -1.4531521, %v591_v2  ;;  %v522_v42 = vmul.f32 0.3275911, %v506_v12  ;;  %v766_v51 = vmul.f32 1.442695, %v748_v26  ;;  %v3092_v58 = vpop.eup %2510  ;;  %v751_v12 = vmul.f32 %v735_v54, %v2987_v3 }
 0x11b   : > { %v636_v18 = vadd.f32 1.4214138, %v620_v43  ;;  %v653_v25 = vmul.f32 %v3019_v23, %v637_v7  ;;  %v683_v52 = vmul.f32 %v3007_v14, %v667_v10  ;;  %v606_v55 = vadd.f32 -1.4531521, %v590_v31 }
 0x11c   : > { %v623_v36 = vmul.f32 %v3049_v50, %v607_v22  ;;  %v547_v43 = vadd.f32 1.0, %v531_v34  ;;  %v533_v7 = vmul.f32 0.3275911, %v3090_v41  ;;  %v538_v8 = vadd.f32 1.0, %v522_v42 }
 0x11d   : > { %v652_v33 = vmul.f32 %v3032_v30, %v636_v18  ;;  %v669_v47 = vadd.f32 -0.28449672, %v653_v25  ;;  %v699_v39 = vadd.f32 0.2548296, %v683_v52  ;;  %2520 = vpow2.f32 %v766_v51  ;;  %v3107_v38 = vpop.eup %2512  ;;  %v445_v51 = vpop.f32.mrf.mxu0 }
 0x11e   : > { %v639_v2 = vadd.f32 1.4214138, %v623_v36  ;;  %v593_v15 = vmul.f32 1.0614054, %v3092_v58  ;;  %v622_v22 = vmul.f32 %v3073_v16, %v606_v55  ;;  %v762_v25 = vmul.f32 1.442695, %v746_v57  ;;  %v2515_v32 = vpop.eup %2514 }
 0x11f   : > { %v668_v61 = vadd.f32 -0.28449672, %v652_v33  ;;  %v685_v10 = vmul.f32 %v3019_v23, %v669_v47  ;;  %v715_v18 = vmul.f32 %v3007_v14, %v699_v39  ;;  %v734_v52 = vsub.f32 0.0, %v2999_v9 }
 0x120   : > { %2522 = vrcp.f32 %v547_v43  ;;  %v655_v14 = vmul.f32 %v3049_v50, %v639_v2  ;;  %v549_v31 = vadd.f32 1.0, %v533_v7  ;;  %v609_v33 = vadd.f32 -1.4531521, %v593_v15  ;;  %v2421_v15 = vpop.f32.mrf.mxu0 }
 0x121   : > { %v684_v26 = vmul.f32 %v3032_v30, %v668_v61  ;;  %2524 = vrcp.f32 %v538_v8  ;;  %v701_v3 = vadd.f32 0.2548296, %v685_v10  ;;  %v736_v34 = vsub.f32 0.0, %v3025_v27 }
 0x122   : > { %v795_v35 = vmul.f32 %v2515_v32, %v715_v18  ;;  %v772_v36 = vmul.f32 1.442695, %v751_v12  ;;  %v638_v42 = vadd.f32 1.4214138, %v622_v22  ;;  %v592_v47 = vmul.f32 1.0614054, %v3107_v38 }
 0x123   : > { %2526 = vpow2.f32 %v762_v25  ;;  %v700_v45 = vadd.f32 0.2548296, %v684_v26  ;;  %v750_v39 = vmul.f32 %v734_v52, %v2999_v9  ;;  %v739_v54 = vsub.f32 0.0, %v3076_v20 }
 0x124   : > { %v3121_v55 = vmul.f32 0.5, %v2957_v49  ;;  %v671_v57 = vadd.f32 -0.28449672, %v655_v14  ;;  %v753_v61 = vmul.f32 %v737_v37, %v3011_v17  ;;  %2528 = vrcp.f32 %v549_v31  ;;  %v323_v49 = vld [vmem:[%s4421_s2 + $0x50] sm:$0xff] }
 0x125   : > { %v717_v43 = vmul.f32 %v3019_v23, %v701_v3  ;;  %v3127_v2 = vmul.f32 0.5, %v2975_v59  ;;  %v625_v7 = vmul.f32 %v3092_v58, %v609_v33  ;;  %v752_v9 = vmul.f32 %v736_v34, %v3025_v27  ;;  %v326_v23 = vld [vmem:[%s4421_s2 + $0x68] sm:$0xff]  ;;  %v2517_v59 = vpop.eup %2516 }
 0x126   : > { %v811_v8 = vsub.f32 1.0, %v795_v35  ;;  %2530 = vpow2.f32 %v772_v36  ;;  %v654_v17 = vmul.f32 %v3073_v16, %v638_v42  ;;  %v608_v10 = vadd.f32 -1.4531521, %v592_v47  ;;  %v3143_v25 = vpop.eup %2518 }
 0x127   : > { %v716_v18 = vmul.f32 %v3032_v30, %v700_v45  ;;  %v3140_v12 = vmul.f32 0.5, %v2977_v60  ;;  %v770_v27 = vmul.f32 1.442695, %v750_v39  ;;  %v755_v22 = vmul.f32 %v739_v54, %v3076_v20 }
 0x128   : > { %v687_v26 = vmul.f32 %v3049_v50, %v671_v57  ;;  %v776_v52 = vmul.f32 1.442695, %v753_v61  ;;  %v738_v14 = vsub.f32 0.0, %v3065_v0  ;;  %v3147_v37 = vadd.f32 %v445_v51, %v323_v49 }
 0x129   : > { %v3149_v31 = vmul.f32 %v2517_v59, %v717_v43  ;;  %v641_v32 = vadd.f32 1.4214138, %v625_v7  ;;  %v774_v3 = vmul.f32 1.442695, %v752_v9  ;;  %v3151_v30 = vadd.f32 %v2421_v15, %v326_v23 }
 0x12a   : > { %4442 = vst [vmem:[#allocation8_spill] sm:$0xff] %v3147_v37  ;;  %v2521_v60 = vpop.eup %2520  ;;  %v843_v33 = vsub.f32 0.0, %v811_v8  ;;  %v670_v34 = vadd.f32 -0.28449672, %v654_v17  ;;  %v3154_v20 = vmul.f32 0.5, %v3005_v13  ;;  %v624_v35 = vmul.f32 %v3107_v38, %v608_v10  ;;  %v455_v17 = vpop.f32.mrf.mxu0 }
 0x12b   : > { %4443 = vst [vmem:[#allocation9_spill] sm:$0xff] %v3151_v30  ;;  %v3157_v36 = vmul.f32 %v2521_v60, %v716_v18  ;;  %2532 = vpow2.f32 %v770_v27  ;;  %v780_v42 = vmul.f32 1.442695, %v755_v22  ;;  %v594_v47 = vmul.f32 1.0614054, %v3143_v25 }
 0x12c   : > { %v703_v45 = vadd.f32 0.2548296, %v687_v26  ;;  %2534 = vpow2.f32 %v776_v52  ;;  %v754_v39 = vmul.f32 %v738_v14, %v3065_v0  ;;  %v3165_v54 = vmul.f32 0.70710677, %v3147_v37 }
 0x12d   : > { %v3160_v51 = vpop.eup %2522  ;;  %v813_v13 = vsub.f32 1.0, %v3149_v31  ;;  %v657_v57 = vmul.f32 %v3092_v58, %v641_v32  ;;  %2536 = vpow2.f32 %v774_v3  ;;  %v3170_v61 = vmul.f32 0.70710677, %v3151_v30 }
 0x12e   : > { %v3172_v43 = vpop.eup %2524  ;;  %v859_v7 = vsel %vm827_vm0, %v811_v8, %v843_v33  ;;  %v686_v0 = vmul.f32 %v3073_v16, %v670_v34  ;;  %v640_v9 = vadd.f32 1.4214138, %v624_v35  ;;  %v3179_v49 = vand.u32 2147483647, %v3165_v54 }
 0x12f   : > { %4444 = vst [vmem:[#allocation10_spill] sm:$0xff] %v3170_v61  ;;  %v812_v10 = vsub.f32 1.0, %v3157_v36  ;;  %v595_v23 = vmul.f32 1.0614054, %v3160_v51  ;;  %2538 = vpow2.f32 %v780_v42  ;;  %v610_v15 = vadd.f32 -1.4531521, %v594_v47 }
 0x130   : > { %v3186_v8 = vpop.eup %2526  ;;  %v719_v59 = vmul.f32 %v3049_v50, %v703_v45  ;;  %v778_v18 = vmul.f32 1.442695, %v754_v39  ;;  %v532_v27 = vmul.f32 0.3275911, %v3179_v49  ;;  %v3191_v22 = vand.u32 2147483647, %v3170_v61  ;;  %v2424_v50 = vpop.f32.mrf.mxu0 }
 0x131   : > { %v3193_v26 = vpop.eup %2528  ;;  %v875_v52 = vadd.f32 1.0, %v859_v7  ;;  %v845_v14 = vsub.f32 0.0, %v813_v13  ;;  %v673_v31 = vadd.f32 -0.28449672, %v657_v57  ;;  %v741_v32 = vsub.f32 0.0, %v3090_v41  ;;  %v328_v39 = vld [vmem:[%s4421_s2 + $0x78] sm:$0xff] }
 0x132   : > { %v702_v3 = vadd.f32 0.2548296, %v686_v0  ;;  %v656_v60 = vmul.f32 %v3107_v38, %v640_v9  ;;  %v548_v33 = vadd.f32 1.0, %v532_v27  ;;  %v535_v34 = vmul.f32 0.3275911, %v3191_v22 }
 0x133   : > { %v2531_v35 = vpop.eup %2530  ;;  %v844_v36 = vsub.f32 0.0, %v812_v10  ;;  %v611_v42 = vadd.f32 -1.4531521, %v595_v23  ;;  %v626_v47 = vmul.f32 %v3143_v25, %v610_v15  ;;  %v3199_v45 = vadd.f32 %v455_v17, %v325_v40 }
 0x134   : > { %v3204_v57 = vmul.f32 %v2531_v35, %v719_v59  ;;  %v597_v7 = vmul.f32 1.0614054, %v3193_v26  ;;  %2540 = vrcp.f32 %v548_v33  ;;  %v551_v0 = vadd.f32 1.0, %v535_v34  ;;  %v465_v35 = vpop.f32.mrf.mxu0 }
 0x135   : > { %4445 = vst [vmem:[#allocation11_spill] sm:$0xff] %v3199_v45  ;;  %v3208_v9 = vmul.f32 %v875_v52, %v3096_v1  ;;  %v861_v23 = vsel %vm829_vm1, %v813_v13, %v845_v14  ;;  %v689_v15 = vmul.f32 %v3092_v58, %v673_v31  ;;  %2542 = vpow2.f32 %v778_v18  ;;  %v327_v1 = vld [vmem:[%s4421_s2 + $0x70] sm:$0xff] }
 0x136   : > { %v718_v17 = vmul.f32 %v3073_v16, %v702_v3  ;;  %v672_v40 = vadd.f32 -0.28449672, %v656_v60  ;;  %v3215_v27 = vmul.f32 0.70710677, %v3199_v45  ;;  %v3217_v59 = vadd.f32 %v2424_v50, %v328_v39 }
 0x137   : > { %v860_v48 = vsel %vm828_vm2, %v812_v10, %v844_v36  ;;  %v627_v13 = vmul.f32 %v3160_v51, %v611_v42  ;;  %v642_v52 = vadd.f32 1.4214138, %v626_v47  ;;  %2544 = vrcp.f32 %v551_v0 }
 0x138   : > { %4446 = vst [vmem:[#allocation12_spill] sm:$0xff] %v3217_v59  ;;  %v2533_v18 = vpop.eup %2532  ;;  %v4428_v16 = vsub.f32 1.0, %v3204_v57  ;;  %v613_v14 = vadd.f32 -1.4531521, %v597_v7  ;;  %v757_v31 = vmul.f32 %v741_v32, %v3090_v41  ;;  %v3228_v3 = vand.u32 2147483647, %v3215_v27 }
 0x139   : > { %v2535_v60 = vpop.eup %2534  ;;  %v705_v33 = vadd.f32 0.2548296, %v689_v15  ;;  %v740_v34 = vsub.f32 0.0, %v3179_v49  ;;  %v3232_v53 = vmul.f32 0.70710677, %v3217_v59  ;;  %v3234_v10 = vadd.f32 %v465_v35, %v327_v1 }
 0x13a   : > { %v3236_v50 = vpop.eup %2536  ;;  %v3238_v36 = vadd.f32 1.0, %v861_v23  ;;  %v876_v42 = vadd.f32 1.0, %v860_v48  ;;  %v3240_v47 = vmul.f32 %v2533_v18, %v718_v17  ;;  %v534_v41 = vmul.f32 0.3275911, %v3228_v3 }
 0x13b   : > { %4447 = vst [vmem:[#allocation13_spill] sm:$0xff] %v3232_v53  ;;  %4448 = vst [vmem:[#allocation14_spill] sm:$0xff] %v3234_v10  ;;  %v688_v32 = vmul.f32 %v3107_v38, %v672_v40  ;;  %v643_v39 = vadd.f32 1.4214138, %v627_v13  ;;  %v658_v7 = vmul.f32 %v3143_v25, %v642_v52  ;;  %v521_v0 = vand.u32 2147483647, %v3232_v53 }
 0x13c   : > { %v3246_v15 = vpop.eup %2538  ;;  %v3250_v35 = vsub.f32 0.0, %v4428_v16  ;;  %v629_v23 = vmul.f32 %v3193_v26, %v613_v14  ;;  %v550_v1 = vadd.f32 1.0, %v534_v41  ;;  %v3254_v17 = vmul.f32 0.70710677, %v3234_v10 }
 0x13d   : > { %v721_v48 = vmul.f32 %v3092_v58, %v705_v33  ;;  %v756_v40 = vmul.f32 %v740_v34, %v3179_v49  ;;  %v537_v13 = vmul.f32 0.3275911, %v521_v0  ;;  %v586_v52 = vmul.f32 1.0614054, %v3172_v43 }
 0x13e   : > { %4449 = vst [vmem:[#allocation15_spill] sm:$0xff] %v3254_v17  ;;  %v814_v18 = vsub.f32 1.0, %v3240_v47  ;;  %v784_v59 = vmul.f32 1.442695, %v757_v31  ;;  %2546 = vrcp.f32 %v550_v1  ;;  %v520_v16 = vand.u32 2147483647, %v3254_v17 }
 0x13f   : > { %v659_v30 = vmul.f32 %v3160_v51, %v643_v39  ;;  %v674_v14 = vadd.f32 -0.28449672, %v658_v7  ;;  %v553_v41 = vadd.f32 1.0, %v537_v13  ;;  %v602_v53 = vadd.f32 -1.4531521, %v586_v52 }
 0x140   : > { %v3263_v10 = vmul.f32 %v876_v42, %v3121_v55  ;;  %v645_v58 = vadd.f32 1.4214138, %v629_v23  ;;  %v743_v49 = vsub.f32 0.0, %v3191_v22  ;;  %v536_v33 = vmul.f32 0.3275911, %v520_v16 }
 0x141   : > { %v3266_v34 = vpop.eup %2540  ;;  %v704_v31 = vadd.f32 0.2548296, %v688_v32  ;;  %v782_v47 = vmul.f32 1.442695, %v756_v40  ;;  %2548 = vrcp.f32 %v553_v41  ;;  %v618_v1 = vmul.f32 %v3172_v43, %v602_v53 }
 0x142   : > { %v3270_v39 = vpop.eup %2542  ;;  %v3272_v7 = vmul.f32 %v2535_v60, %v721_v48  ;;  %v596_v55 = vmul.f32 1.0614054, %v3266_v34  ;;  %v742_v42 = vsub.f32 0.0, %v3228_v3  ;;  %v552_v23 = vadd.f32 1.0, %v536_v33 }
 0x143   : > { %v846_v13 = vsub.f32 0.0, %v814_v18  ;;  %v675_v52 = vadd.f32 -0.28449672, %v659_v30  ;;  %v690_v6 = vmul.f32 %v3143_v25, %v674_v14  ;;  %v634_v45 = vadd.f32 1.4214138, %v618_v1 }
 0x144   : > { %v3277_v17 = vpop.eup %2544  ;;  %v661_v32 = vmul.f32 %v3193_v26, %v645_v58  ;;  %v612_v40 = vadd.f32 -1.4531521, %v596_v55  ;;  %v759_v53 = vmul.f32 %v743_v49, %v3191_v22  ;;  %2550 = vrcp.f32 %v552_v23 }
 0x145   : > { %2552 = vpow2.f32 %v782_v47  ;;  %v599_v60 = vmul.f32 1.0614054, %v3277_v17  ;;  %v745_v48 = vsub.f32 0.0, %v521_v0  ;;  %v650_v41 = vmul.f32 %v3172_v43, %v634_v45 }
 0x146   : > { %v720_v30 = vmul.f32 %v3107_v38, %v704_v31  ;;  %v628_v14 = vmul.f32 %v3266_v34, %v612_v40  ;;  %v758_v1 = vmul.f32 %v742_v42, %v3228_v3  ;;  %v691_v58 = vmul.f32 %v3160_v51, %v675_v52 }
 0x147   : > { %v706_v55 = vadd.f32 0.2548296, %v690_v6  ;;  %v615_v61 = vadd.f32 -1.4531521, %v599_v60  ;;  %v666_v22 = vadd.f32 -0.28449672, %v650_v41  ;;  %2554 = vpow2.f32 %v784_v59 }
 0x148   : > { %v677_v49 = vadd.f32 -0.28449672, %v661_v32  ;;  %v644_v47 = vadd.f32 1.4214138, %v628_v14  ;;  %v744_v23 = vsub.f32 0.0, %v520_v16  ;;  %v761_v37 = vmul.f32 %v745_v48, %v521_v0 }
 0x149   : > { %v631_v44 = vmul.f32 %v3277_v17, %v615_v61  ;;  %v788_v45 = vmul.f32 1.442695, %v759_v53  ;;  %v682_v33 = vmul.f32 %v3172_v43, %v666_v22  ;;  %v3292_v38 = vsel %vm830_vm3, %v814_v18, %v846_v13 }
 0x14a   : > { %v3295_v3 = vmul.f32 %v3236_v50, %v720_v30  ;;  %v660_v6 = vmul.f32 %v3266_v34, %v644_v47  ;;  %v786_v31 = vmul.f32 1.442695, %v758_v1  ;;  %v707_v59 = vadd.f32 0.2548296, %v691_v58 }
 0x14b   : > { %v3298_v42 = vpop.eup %2546  ;;  %v722_v52 = vmul.f32 %v3143_v25, %v706_v55  ;;  %v647_v61 = vadd.f32 1.4214138, %v631_v44  ;;  %v698_v32 = vadd.f32 0.2548296, %v682_v33  ;;  %v693_v0 = vmul.f32 %v3193_v26, %v677_v49 }
 0x14c   : > { %v676_v4 = vadd.f32 -0.28449672, %v660_v6  ;;  %v598_v18 = vmul.f32 1.0614054, %v3298_v42  ;;  %v760_v13 = vmul.f32 %v744_v23, %v520_v16  ;;  %2556 = vpow2.f32 %v788_v45 }
 0x14d   : > { %v663_v50 = vmul.f32 %v3277_v17, %v647_v61  ;;  %v792_v40 = vmul.f32 1.442695, %v761_v37  ;;  %v714_v53 = vmul.f32 %v3172_v43, %v698_v32  ;;  %v816_v44 = vsub.f32 1.0, %v3295_v3 }
 0x14e   : > { %v3306_v60 = vpop.eup %2548  ;;  %v692_v25 = vmul.f32 %v3266_v34, %v676_v4  ;;  %v614_v48 = vadd.f32 -1.4531521, %v598_v18  ;;  %2558 = vpow2.f32 %v786_v31  ;;  %v723_v16 = vmul.f32 %v3160_v51, %v707_v59 }
 0x14f   : > { %v679_v41 = vadd.f32 -0.28449672, %v663_v50  ;;  %v601_v33 = vmul.f32 1.0614054, %v3306_v60  ;;  %v794_v37 = vmul.f32 %v3186_v8, %v714_v53  ;;  %v3316_v43 = vmul.f32 %v3270_v39, %v722_v52 }
 0x150   : > { %v708_v30 = vadd.f32 0.2548296, %v692_v25  ;;  %v630_v14 = vmul.f32 %v3298_v42, %v614_v48  ;;  %v790_v1 = vmul.f32 1.442695, %v760_v13  ;;  %v709_v55 = vadd.f32 0.2548296, %v693_v0 }
 0x151   : > { %v3319_v58 = vpop.eup %2550  ;;  %v617_v22 = vadd.f32 -1.4531521, %v601_v33  ;;  %2560 = vpow2.f32 %v792_v40  ;;  %v810_v49 = vsub.f32 1.0, %v794_v37  ;;  %v695_v23 = vmul.f32 %v3277_v17, %v679_v41 }
 0x152   : > { %v2553_v51 = vpop.eup %2552  ;;  %v724_v47 = vmul.f32 %v3266_v34, %v708_v30  ;;  %v646_v8 = vadd.f32 1.4214138, %v630_v14  ;;  %v600_v45 = vmul.f32 1.0614054, %v3319_v58  ;;  %v848_v39 = vsub.f32 0.0, %v816_v44 }
 0x153   : > { %v3325_v3 = vmul.f32 %v3246_v15, %v723_v16  ;;  %v633_v6 = vmul.f32 %v3306_v60, %v617_v22  ;;  %v842_v31 = vsub.f32 0.0, %v810_v49  ;;  %v818_v59 = vsub.f32 1.0, %v3316_v43 }
 0x154   : > { %v662_v52 = vmul.f32 %v3298_v42, %v646_v8  ;;  %v616_v61 = vadd.f32 -1.4531521, %v600_v45  ;;  %2562 = vpow2.f32 %v790_v1  ;;  %v2555_v34 = vpop.eup %2554  ;;  %v725_v32 = vmul.f32 %v3193_v26, %v709_v55 }
 0x155   : > { %v804_v0 = vmul.f32 %v2553_v51, %v724_v47  ;;  %v649_v4 = vadd.f32 1.4214138, %v633_v6  ;;  %v858_v15 = vsel %vm826_vm4, %v810_v49, %v842_v31  ;;  %v711_v18 = vadd.f32 0.2548296, %v695_v23 }
 0x156   : > { %v678_v13 = vadd.f32 -0.28449672, %v662_v52  ;;  %v632_v50 = vmul.f32 %v3319_v58, %v616_v61  ;;  %v874_v40 = vadd.f32 1.0, %v858_v15  ;;  %v4450_v53 = vsub.f32 1.0, %v3204_v57 }
 0x157   : > { %v878_v48 = vadd.f32 1.0, %v3292_v38  ;;  %v864_v26 = vsel %vm832_vm6, %v816_v44, %v848_v39  ;;  %v665_v16 = vmul.f32 %v3306_v60, %v649_v4  ;;  %v819_v56 = vsub.f32 1.0, %v3325_v3 }
 0x158   : > { %v863_v25 = vsel %vm831_vm5, %v4450_v53, %v3250_v35  ;;  %v694_v41 = vmul.f32 %v3298_v42, %v678_v13  ;;  %v648_v33 = vadd.f32 1.4214138, %v632_v50  ;;  %v890_v37 = vmul.f32 %v874_v40, %v3103_v21  ;;  %v4453_v53 = vld [vmem:[#allocation8_spill] sm:$0xff] }
 0x159   : > { %v850_v57 = vsub.f32 0.0, %v818_v59  ;;  %v805_v43 = vmul.f32 %v2555_v34, %v725_v32  ;;  %v820_v63 = vsub.f32 1.0, %v804_v0  ;;  %v681_v35 = vadd.f32 -0.28449672, %v665_v16  ;;  %v2557_v30 = vpop.eup %2556 }
 0x15a   : > { %v4451_v38 = vsub.f32 1.0, %v3272_v7  ;;  %v727_v44 = vmul.f32 %v3277_v17, %v711_v18  ;;  %v710_v14 = vadd.f32 0.2548296, %v694_v41  ;;  %v664_v1 = vmul.f32 %v3319_v58, %v648_v33  ;;  %2433 = vmatprep.mubr.msk.f32.mxu1 %vm917_vm7, %v890_v37 }
 0x15b   : > { %v2559_v55 = vpop.eup %2558  ;;  %v893_v22 = vmul.f32 %v3238_v36, %v3112_v28  ;;  %v879_v21 = vadd.f32 1.0, %v863_v25  ;;  %v894_v49 = vmul.f32 %v878_v48, %v3140_v12  ;;  %v697_v51 = vmul.f32 %v3306_v60, %v681_v35  ;;  %2434 = vmatmul.mubr.msk.f32.vlgmr.msra.gmra.mxu1 %vm917_vm7, %v3208_v9 }
 0x15c   : > { %v849_v19 = vsub.f32 0.0, %v4451_v38  ;;  %v880_v47 = vadd.f32 1.0, %v864_v26  ;;  %v851_v23 = vsub.f32 0.0, %v819_v56  ;;  %v726_v17 = vmul.f32 %v3298_v42, %v710_v14  ;;  %2436 = vmatprep.mubr.msk.f32.mxu1 %vm917_vm7, %v3263_v10  ;;  %v4458_v14 = vld [vmem:[#allocation7_spill] sm:$0xff] }
 0x15d   : > { %v680_v8 = vadd.f32 -0.28449672, %v664_v1  ;;  %v866_v45 = vsel %vm834_vm8, %v818_v59, %v850_v57  ;;  %v821_v28 = vsub.f32 1.0, %v805_v43  ;;  %v852_v36 = vsub.f32 0.0, %v820_v63  ;;  %v4455_v43 = vld [vmem:[#allocation10_spill] sm:$0xff] }
 0x15e   : > { %v713_v39 = vadd.f32 0.2548296, %v697_v51  ;;  %v2561_v12 = vpop.eup %2560  ;;  %v4452_v3 = vmov %v4451_v38  ;;  %v807_v6 = vmul.f32 %v2557_v30, %v727_v44  ;;  %v806_v31 = vmul.f32 %v2559_v55, %v726_v17  ;;  %v4457_v30 = vld [vmem:[#allocation11_spill] sm:$0xff]  ;;  %v4459_v51 = vld [vmem:[#allocation13_spill] sm:$0xff] }
 0x15f   : > { %v865_v9 = vsel %vm833_vm9, %v4452_v3, %v849_v19  ;;  %v696_v42 = vmul.f32 %v3319_v58, %v680_v8  ;;  %v895_v52 = vmul.f32 %v879_v21, %v3127_v2  ;;  %v482_v10 = vmul.f32 0.5, %v3030_v29  ;;  %2437 = vmatmul.mubr.msk.f32.gmra.mxu1 %vm917_vm7, %v893_v22  ;;  %v4461_v8 = vld [vmem:[#allocation9_spill] sm:$0xff] }
 0x160   : > { %vm836_vm11 = vcmp.ge.f32.partialorder %v3165_v54, 0.0  ;;  %v729_v46 = vmul.f32 %v3306_v60, %v713_v39  ;;  %v896_v59 = vmul.f32 %v880_v47, %v3154_v20  ;;  %v882_v7 = vadd.f32 1.0, %v866_v45  ;;  %2439 = vmatprep.mubr.msk.f32.mxu1 %vm917_vm7, %v894_v49 }
 0x161   : > { %v822_v61 = vsub.f32 1.0, %v806_v31  ;;  %v712_v11 = vadd.f32 0.2548296, %v696_v42  ;;  %v2563_v34 = vpop.eup %2562  ;;  %v881_v32 = vadd.f32 1.0, %v865_v9  ;;  %v867_v2 = vsel %vm835_vm10, %v819_v56, %v851_v23  ;;  %v4454_v56 = vld [vmem:[#allocation6_spill] sm:$0xff] }
 0x162   : > { %v853_v0 = vsub.f32 0.0, %v821_v28  ;;  %v868_v29 = vsel %vm836_vm11, %v820_v63, %v852_v36  ;;  %v823_v4 = vsub.f32 1.0, %v807_v6  ;;  %v809_v15 = vmul.f32 %v2561_v12, %v729_v46  ;;  %v4456_v63 = vld [vmem:[#allocation15_spill] sm:$0xff]  ;;  %v4460_v23 = vld [vmem:[#allocation14_spill] sm:$0xff]  ;;  %v4462_v12 = vld [vmem:[#allocation12_spill] sm:$0xff] }
 0x163   : > { %v854_v54 = vsub.f32 0.0, %v822_v61  ;;  %v728_v60 = vmul.f32 %v3319_v58, %v712_v11  ;;  %v481_v18 = vmul.f32 0.5, %v2992_v5  ;;  %2440 = vmatmul.mubr.msk.f32.gmra.mxu1 %vm917_vm7, %v895_v52  ;;  %v898_v20 = vmul.f32 %v882_v7, %v482_v10  ;;  %v2293_v6 = vld [vmem:[%s4423_s4] ss:$0 sm:$0xff] }
 0x164   : > { %v884_v13 = vadd.f32 1.0, %v868_v29  ;;  %vm838_vm13 = vcmp.ge.f32.partialorder %v3215_v27, 0.0  ;;  %2442 = vmatprep.mubr.msk.f32.mxu1 %vm917_vm7, %v896_v59  ;;  %v883_v40 = vadd.f32 1.0, %v867_v2  ;;  %v484_v25 = vmul.f32 0.5, %v4453_v53 }
 0x165   : > { %v808_v50 = vmul.f32 %v2563_v34, %v728_v60  ;;  %v897_v62 = vmul.f32 %v881_v32, %v481_v18  ;;  %v870_v48 = vsel %vm838_vm13, %v822_v61, %v854_v54  ;;  %v869_v26 = vsel %vm837_vm12, %v821_v28, %v853_v0 }
 0x166   : > { %v855_v58 = vsub.f32 0.0, %v823_v4  ;;  %v825_v16 = vsub.f32 1.0, %v809_v15  ;;  %v483_v24 = vmul.f32 0.5, %v4454_v56  ;;  %v900_v41 = vmul.f32 %v884_v13, %v484_v25 }
 0x167   : > { %v824_v5 = vsub.f32 1.0, %v808_v50  ;;  %2443 = vmatmul.mubr.msk.f32.gmra.mxu1 %vm917_vm7, %v897_v62  ;;  %v886_v33 = vadd.f32 1.0, %v870_v48  ;;  %v885_v57 = vadd.f32 1.0, %v869_v26  ;;  %vm839_vm14 = vcmp.ge.f32.partialorder %v4455_v43, 0.0 }
 0x168   : > { %2445 = vmatprep.mubr.msk.f32.mxu1 %vm917_vm7, %v898_v20  ;;  %v899_v27 = vmul.f32 %v883_v40, %v483_v24  ;;  %vm840_vm15 = vcmp.ge.f32.partialorder %v4456_v63, 0.0  ;;  %v871_v35 = vsel %vm839_vm14, %v823_v4, %v855_v58  ;;  %v486_v38 = vmul.f32 0.5, %v4457_v30 }
 0x169   : > { %v856_v37 = vsub.f32 0.0, %v824_v5  ;;  %v857_v19 = vsub.f32 0.0, %v825_v16  ;;  %v485_v1 = vmul.f32 0.5, %v4458_v14  ;;  %v887_v49 = vadd.f32 1.0, %v871_v35 }
 0x16a   : > { %v902_v55 = vmul.f32 %v886_v33, %v486_v38  ;;  %vm841_vm0 = vcmp.ge.f32.partialorder %v4459_v51, 0.0  ;;  %v488_v17 = vmul.f32 0.5, %v4460_v23  ;;  %v487_v45 = vmul.f32 0.5, %v4461_v8 }
 0x16b   : > { %v872_v44 = vsel %vm840_vm15, %v824_v5, %v856_v37  ;;  %2446 = vmatmul.mubr.msk.f32.gmra.mxu1 %vm917_vm7, %v899_v27  ;;  %v901_v21 = vmul.f32 %v885_v57, %v485_v1  ;;  %v873_v47 = vsel %vm841_vm0, %v825_v16, %v857_v19  ;;  %v489_v3 = vmul.f32 0.5, %v4462_v12 }
 0x16c   : > { %v888_v22 = vadd.f32 1.0, %v872_v44  ;;  %2448 = vmatprep.mubr.msk.f32.mxu1 %vm917_vm7, %v900_v41  ;;  %v903_v36 = vmul.f32 %v887_v49, %v487_v45  ;;  %v889_v39 = vadd.f32 1.0, %v873_v47  ;;  %vm2754_vm5 = vmmov 1  }
 0x16e   : > { %v904_v28 = vmul.f32 %v888_v22, %v488_v17  ;;  %v905_v9 = vmul.f32 %v889_v39, %v489_v3 }
 0x16f   : > { %2449 = vmatmul.mubr.msk.f32.gmra.mxu1 %vm917_vm7, %v901_v21 }
 0x170   : > { %2451 = vmatprep.mubr.msk.f32.mxu1 %vm917_vm7, %v902_v55 }
 0x173   : > { %2452 = vmatmul.mubr.msk.f32.gmra.mxu1 %vm917_vm7, %v903_v36 }
 0x174   : > { %2454 = vmatprep.mubr.msk.f32.mxu1 %vm917_vm7, %v904_v28 }
 0x177   : > { %2455 = vmatmul.mubr.msk.f32.gmra.mxu1 %vm917_vm7, %v905_v9 }
 0x21b   : > { %v2435_v31 = vpop.f32.mrf.mxu1 }
 0x21c   : > { %v3407_v42 = vadd.f32 %v2435_v31, %v2293_v6 }
 0x21d   : > { %v1032_v52 = vpop.f32.mrf.mxu1 }
 0x21e   : > { %v3409_v10 = vadd.f32 %v2293_v6, %v1032_v52  ;;  %v1114_v46 = vsel %vm917_vm7, %v3407_v42, 0.0 }
 0x21f   : > { %1115 = vadd.xlane.f32.xlu0 %v1114_v46  ;;  %v2438_v59 = vpop.f32.mrf.mxu1 }
 0x220   : > { %v3413_v7 = vadd.f32 %v2438_v59, %v2293_v6  ;;  %v1111_v32 = vsel %vm917_vm7, %v3409_v10, 0.0 }
 0x221   : > { %v1042_v61 = vpop.f32.mrf.mxu1 }
 0x222   : > { %v3415_v11 = vadd.f32 %v2293_v6, %v1042_v61  ;;  %v1120_v34 = vsel %vm917_vm7, %v3413_v7, 0.0 }
 0x223   : > { %1121 = vadd.xlane.f32.xlu1 %v1120_v34  ;;  %v2441_v2 = vpop.f32.mrf.mxu1  ;;  %1112 = vadd.xlane.f32.xlu0 %v1111_v32 }
 0x224   : > { %v3421_v29 = vadd.f32 %v2441_v2, %v2293_v6  ;;  %v1117_v54 = vsel %vm917_vm7, %v3415_v11, 0.0 }
 0x225   : > { %v1052_v0 = vpop.f32.mrf.mxu1 }
 0x226   : > { %v3423_v4 = vadd.f32 %v2293_v6, %v1052_v0  ;;  %v1126_v50 = vsel %vm917_vm7, %v3421_v29, 0.0 }
 0x227   : > { %v2444_v15 = vpop.f32.mrf.mxu1  ;;  %1118 = vadd.xlane.f32.xlu1 %v1117_v54 }
 0x228   : > { %v1123_v60 = vsel %vm917_vm7, %v3423_v4, 0.0  ;;  %v3429_v20 = vadd.f32 %v2444_v15, %v2293_v6 }
 0x229   : > { %v1062_v18 = vpop.f32.mrf.mxu1  ;;  %1124 = vadd.xlane.f32.xlu0 %v1123_v60 }
 0x22a   : > { %v3431_v13 = vadd.f32 %v2293_v6, %v1062_v18  ;;  %v1132_v26 = vsel %vm917_vm7, %v3429_v20, 0.0 }
 0x22b   : > { %v2447_v62 = vpop.f32.mrf.mxu1  ;;  %1127 = vadd.xlane.f32.xlu1 %v1126_v50 }
 0x22c   : > { %v1129_v40 = vsel %vm917_vm7, %v3431_v13, 0.0  ;;  %v3437_v25 = vadd.f32 %v2447_v62, %v2293_v6 }
 0x22d   : > { %v1072_v53 = vpop.f32.mrf.mxu1  ;;  %1130 = vadd.xlane.f32.xlu0 %v1129_v40 }
 0x22e   : > { %v3439_v48 = vadd.f32 %v2293_v6, %v1072_v53  ;;  %v1138_v41 = vsel %vm917_vm7, %v3437_v25, 0.0 }
 0x22f   : > { %v2450_v58 = vpop.f32.mrf.mxu1  ;;  %1133 = vadd.xlane.f32.xlu1 %v1132_v26 }
 0x230   : > { %v1135_v16 = vsel %vm917_vm7, %v3439_v48, 0.0  ;;  %v3445_v56 = vadd.f32 %v2450_v58, %v2293_v6 }
 0x231   : > { %v1082_v5 = vpop.f32.mrf.mxu1  ;;  %1136 = vadd.xlane.f32.xlu0 %v1135_v16 }
 0x232   : > { %v3447_v24 = vadd.f32 %v2293_v6, %v1082_v5  ;;  %v1144_v63 = vsel %vm917_vm7, %v3445_v56, 0.0 }
 0x233   : > { %v2453_v33 = vpop.f32.mrf.mxu1  ;;  %1139 = vadd.xlane.f32.xlu1 %v1138_v41 }
 0x234   : > { %v1141_v37 = vsel %vm917_vm7, %v3447_v24, 0.0  ;;  %v3453_v57 = vadd.f32 %v2453_v33, %v2293_v6 }
 0x235   : > { %v1092_v27 = vpop.f32.mrf.mxu1  ;;  %1142 = vadd.xlane.f32.xlu0 %v1141_v37 }
 0x236   : > { %v3455_v43 = vadd.f32 %v2293_v6, %v1092_v27  ;;  %v1150_v14 = vsel %vm917_vm7, %v3453_v57, 0.0 }
 0x237   : > { %v2456_v35 = vpop.f32.mrf.mxu1  ;;  %1145 = vadd.xlane.f32.xlu1 %v1144_v63 }
 0x238   : > { %v1147_v30 = vsel %vm917_vm7, %v3455_v43, 0.0  ;;  %v3461_v19 = vadd.f32 %v2456_v35, %v2293_v6 }
 0x239   : > { %v1102_v38 = vpop.f32.mrf.mxu1  ;;  %1148 = vadd.xlane.f32.xlu0 %v1147_v30 }
 0x23a   : > { %v3463_v44 = vadd.f32 %v2293_v6, %v1102_v38  ;;  %v1156_v55 = vsel %vm917_vm7, %v3461_v19, 0.0 }
 0x23b   : > { %1151 = vadd.xlane.f32.xlu1 %v1150_v14 }
 0x23c   : > { %v1153_v1 = vsel %vm917_vm7, %v3463_v44, 0.0 }
 0x23d   : > { %1154 = vadd.xlane.f32.xlu0 %v1153_v1 }
 0x23f   : > { %1157 = vadd.xlane.f32.xlu1 %v1156_v55 }
 0x2a8   : > { %v1116_v22 = vpop.xlane.xlu0 %1115 }
 0x2a9   : > { %v1161_v21 = vmul.f32 0.03125, %v1116_v22 }
 0x2ab   : > { %v3472_v49 = vsub.f32 %v3407_v42, %v1161_v21 }
 0x2ac   : > { %v1122_v51 = vpop.xlane.xlu1 %1121  ;;  %v1113_v47 = vpop.xlane.xlu0 %1112 }
 0x2ad   : > { %v1163_v23 = vmul.f32 0.03125, %v1122_v51  ;;  %v1160_v17 = vmul.f32 0.03125, %v1113_v47  ;;  %v1193_v8 = vmul.f32 %v3472_v49, %v3472_v49 }
 0x2af   : > { %v3477_v45 = vsub.f32 %v3413_v7, %v1163_v23  ;;  %v3480_v28 = vsub.f32 %v3409_v10, %v1160_v17  ;;  %v1211_v36 = vsel %vm917_vm7, %v1193_v8, 0.0 }
 0x2b0   : > { %1212 = vadd.xlane.f32.xlu1 %v1211_v36  ;;  %v1119_v39 = vpop.xlane.xlu1 %1118 }
 0x2b1   : > { %v1162_v12 = vmul.f32 0.03125, %v1119_v39  ;;  %v1195_v3 = vmul.f32 %v3477_v45, %v3477_v45  ;;  %v1192_v9 = vmul.f32 %v3480_v28, %v3480_v28 }
 0x2b2   : > { %v1125_v6 = vpop.xlane.xlu0 %1124 }
 0x2b3   : > { %v3488_v31 = vsub.f32 %v3415_v11, %v1162_v12  ;;  %v1164_v42 = vmul.f32 0.03125, %v1125_v6  ;;  %v1217_v52 = vsel %vm917_vm7, %v1195_v3, 0.0  ;;  %v1208_v10 = vsel %vm917_vm7, %v1192_v9, 0.0 }
 0x2b4   : > { %1218 = vadd.xlane.f32.xlu1 %v1217_v52  ;;  %v1128_v46 = vpop.xlane.xlu1 %1127  ;;  %1209 = vadd.xlane.f32.xlu0 %v1208_v10 }
 0x2b5   : > { %v3493_v59 = vsub.f32 %v3423_v4, %v1164_v42  ;;  %v1165_v7 = vmul.f32 0.03125, %v1128_v46  ;;  %v1194_v61 = vmul.f32 %v3488_v31, %v3488_v31 }
 0x2b6   : > { %v1131_v34 = vpop.xlane.xlu0 %1130 }
 0x2b7   : > { %v3498_v32 = vsub.f32 %v3421_v29, %v1165_v7  ;;  %v1166_v11 = vmul.f32 0.03125, %v1131_v34  ;;  %v1214_v2 = vsel %vm917_vm7, %v1194_v61, 0.0  ;;  %v1196_v0 = vmul.f32 %v3493_v59, %v3493_v59 }
 0x2b8   : > { %v1134_v54 = vpop.xlane.xlu1 %1133  ;;  %1215 = vadd.xlane.f32.xlu0 %v1214_v2 }
 0x2b9   : > { %v3504_v15 = vsub.f32 %v3431_v13, %v1166_v11  ;;  %v1167_v4 = vmul.f32 0.03125, %v1134_v54  ;;  %v1197_v60 = vmul.f32 %v3498_v32, %v3498_v32  ;;  %v1220_v50 = vsel %vm917_vm7, %v1196_v0, 0.0 }
 0x2ba   : > { %v1137_v18 = vpop.xlane.xlu0 %1136 }
 0x2bb   : > { %v3510_v29 = vsub.f32 %v3429_v20, %v1167_v4  ;;  %v1168_v62 = vmul.f32 0.03125, %v1137_v18  ;;  %v1223_v40 = vsel %vm917_vm7, %v1197_v60, 0.0  ;;  %v1198_v53 = vmul.f32 %v3504_v15, %v3504_v15 }
 0x2bc   : > { %1224 = vadd.xlane.f32.xlu1 %v1223_v40  ;;  %v1140_v26 = vpop.xlane.xlu1 %1139  ;;  %1221 = vadd.xlane.f32.xlu0 %v1220_v50 }
 0x2bd   : > { %v3516_v13 = vsub.f32 %v3439_v48, %v1168_v62  ;;  %v1169_v58 = vmul.f32 0.03125, %v1140_v26  ;;  %v1199_v16 = vmul.f32 %v3510_v29, %v3510_v29  ;;  %v1226_v20 = vsel %vm917_vm7, %v1198_v53, 0.0 }
 0x2be   : > { %v1143_v5 = vpop.xlane.xlu0 %1142 }
 0x2bf   : > { %v3522_v41 = vsub.f32 %v3437_v25, %v1169_v58  ;;  %v1170_v33 = vmul.f32 0.03125, %v1143_v5  ;;  %v1229_v37 = vsel %vm917_vm7, %v1199_v16, 0.0  ;;  %v1200_v27 = vmul.f32 %v3516_v13, %v3516_v13 }
 0x2c0   : > { %1230 = vadd.xlane.f32.xlu1 %v1229_v37  ;;  %v1146_v63 = vpop.xlane.xlu1 %1145  ;;  %1227 = vadd.xlane.f32.xlu0 %v1226_v20 }
 0x2c1   : > { %v3528_v48 = vsub.f32 %v3447_v24, %v1170_v33  ;;  %v1171_v35 = vmul.f32 0.03125, %v1146_v63  ;;  %v1201_v30 = vmul.f32 %v3522_v41, %v3522_v41  ;;  %v1232_v25 = vsel %vm917_vm7, %v1200_v27, 0.0  ;;  %v3570_v63 = vld [vmem:[%s4424_s5] ss:$0 sm:$0xff] }
 0x2c2   : > { %v1149_v38 = vpop.xlane.xlu0 %1148 }
 0x2c3   : > { %v3534_v14 = vsub.f32 %v3445_v56, %v1171_v35  ;;  %v1172_v1 = vmul.f32 0.03125, %v1149_v38  ;;  %v1235_v55 = vsel %vm917_vm7, %v1201_v30, 0.0  ;;  %v1202_v22 = vmul.f32 %v3528_v48, %v3528_v48 }
 0x2c4   : > { %1236 = vadd.xlane.f32.xlu1 %v1235_v55  ;;  %v1152_v21 = vpop.xlane.xlu1 %1151  ;;  %1233 = vadd.xlane.f32.xlu0 %v1232_v25 }
 0x2c5   : > { %v3540_v24 = vsub.f32 %v3455_v43, %v1172_v1  ;;  %v1173_v51 = vmul.f32 0.03125, %v1152_v21  ;;  %v1203_v47 = vmul.f32 %v3534_v14, %v3534_v14  ;;  %v1238_v56 = vsel %vm917_vm7, %v1202_v22, 0.0 }
 0x2c6   : > { %v1155_v23 = vpop.xlane.xlu0 %1154 }
 0x2c7   : > { %v3546_v17 = vsub.f32 %v3453_v57, %v1173_v51  ;;  %v1174_v8 = vmul.f32 0.03125, %v1155_v23  ;;  %v1241_v36 = vsel %vm917_vm7, %v1203_v47, 0.0  ;;  %v1204_v39 = vmul.f32 %v3540_v24, %v3540_v24 }
 0x2c8   : > { %1242 = vadd.xlane.f32.xlu1 %v1241_v36  ;;  %v1158_v12 = vpop.xlane.xlu1 %1157  ;;  %1239 = vadd.xlane.f32.xlu0 %v1238_v56 }
 0x2c9   : > { %v3552_v43 = vsub.f32 %v3463_v44, %v1174_v8  ;;  %v1175_v3 = vmul.f32 0.03125, %v1158_v12  ;;  %v1205_v9 = vmul.f32 %v3546_v17, %v3546_v17  ;;  %v1244_v42 = vsel %vm917_vm7, %v1204_v39, 0.0 }
 0x2cb   : > { %v3557_v6 = vsub.f32 %v3461_v19, %v1175_v3  ;;  %v1247_v57 = vsel %vm917_vm7, %v1205_v9, 0.0  ;;  %v1206_v52 = vmul.f32 %v3552_v43, %v3552_v43 }
 0x2cc   : > { %1248 = vadd.xlane.f32.xlu1 %v1247_v57  ;;  %1245 = vadd.xlane.f32.xlu0 %v1244_v42 }
 0x2cd   : > { %v1207_v44 = vmul.f32 %v3557_v6, %v3557_v6  ;;  %v1250_v46 = vsel %vm917_vm7, %v1206_v52, 0.0 }
 0x2cf   : > { %v1253_v10 = vsel %vm917_vm7, %v1207_v44, 0.0 }
 0x2d0   : > { %1254 = vadd.xlane.f32.xlu1 %v1253_v10  ;;  %1251 = vadd.xlane.f32.xlu0 %v1250_v46 }
 0x339   : > { %v1213_v19 = vpop.xlane.xlu1 %1212 }
 0x33a   : > { %v1257_v7 = vmul.f32 0.03125, %v1213_v19 }
 0x33c   : > { %v1273_v61 = vadd.f32 1e-06, %v1257_v7 }
 0x33d   : > { %v1219_v34 = vpop.xlane.xlu1 %1218  ;;  %v1210_v11 = vpop.xlane.xlu0 %1209 }
 0x33e   : > { %2564 = vrsqrt.f32 %v1273_v61  ;;  %v1259_v2 = vmul.f32 0.03125, %v1219_v34  ;;  %v1256_v0 = vmul.f32 0.03125, %v1210_v11 }
 0x340   : > { %v1275_v54 = vadd.f32 1e-06, %v1259_v2  ;;  %v1272_v4 = vadd.f32 1e-06, %v1256_v0 }
 0x341   : > { %v1216_v60 = vpop.xlane.xlu0 %1215 }
 0x342   : > { %2566 = vrsqrt.f32 %v1275_v54  ;;  %v1258_v18 = vmul.f32 0.03125, %v1216_v60 }
 0x343   : > { %2568 = vrsqrt.f32 %v1272_v4 }
 0x344   : > { %v1274_v50 = vadd.f32 1e-06, %v1258_v18 }
 0x345   : > { %v1225_v62 = vpop.xlane.xlu1 %1224  ;;  %v1222_v40 = vpop.xlane.xlu0 %1221 }
 0x346   : > { %2570 = vrsqrt.f32 %v1274_v50  ;;  %v1261_v53 = vmul.f32 0.03125, %v1225_v62  ;;  %v1260_v26 = vmul.f32 0.03125, %v1222_v40 }
 0x348   : > { %v1277_v58 = vadd.f32 1e-06, %v1261_v53  ;;  %v1276_v16 = vadd.f32 1e-06, %v1260_v26 }
 0x349   : > { %v1231_v5 = vpop.xlane.xlu1 %1230  ;;  %v1228_v20 = vpop.xlane.xlu0 %1227 }
 0x34a   : > { %2572 = vrsqrt.f32 %v1277_v58  ;;  %v1263_v33 = vmul.f32 0.03125, %v1231_v5  ;;  %v1262_v37 = vmul.f32 0.03125, %v1228_v20 }
 0x34b   : > { %v2565_v27 = vpop.eup %2564  ;;  %2574 = vrsqrt.f32 %v1276_v16 }
 0x34c   : > { %v1279_v35 = vadd.f32 1e-06, %v1263_v33  ;;  %v1278_v30 = vadd.f32 1e-06, %v1262_v37  ;;  %v1305_v38 = vmul.f32 %v2565_v27, %v3472_v49 }
 0x34d   : > { %v1237_v25 = vpop.xlane.xlu1 %1236  ;;  %v1234_v1 = vpop.xlane.xlu0 %1233 }
 0x34e   : > { %2576 = vrsqrt.f32 %v1279_v35  ;;  %v1265_v55 = vmul.f32 0.03125, %v1237_v25  ;;  %v1264_v22 = vmul.f32 0.03125, %v1234_v1  ;;  %v1329_v21 = vmul.f32 %v3570_v63, %v1305_v38 }
 0x34f   : > { %v2567_v51 = vpop.eup %2566  ;;  %2578 = vrsqrt.f32 %v1278_v30 }
 0x350   : > { %v2569_v47 = vpop.eup %2568  ;;  %v1281_v23 = vadd.f32 1e-06, %v1265_v55  ;;  %v1280_v56 = vadd.f32 1e-06, %v1264_v22  ;;  %v1347_v8 = vsel %vm917_vm7, %v1329_v21, 0.0  ;;  %v1307_v36 = vmul.f32 %v2567_v51, %v3477_v45 }
 0x351   : > { %1348 = vadd.xlane.f32.xlu1 %v1347_v8  ;;  %v1243_v39 = vpop.xlane.xlu1 %1242  ;;  %v1240_v12 = vpop.xlane.xlu0 %1239  ;;  %v1304_v49 = vmul.f32 %v2569_v47, %v3480_v28 }
 0x352   : > { %2580 = vrsqrt.f32 %v1281_v23  ;;  %v1267_v3 = vmul.f32 0.03125, %v1243_v39  ;;  %v1266_v9 = vmul.f32 0.03125, %v1240_v12  ;;  %v1331_v57 = vmul.f32 %v3570_v63, %v1307_v36 }
 0x353   : > { %v2571_v42 = vpop.eup %2570  ;;  %2582 = vrsqrt.f32 %v1280_v56  ;;  %v1328_v52 = vmul.f32 %v3570_v63, %v1304_v49 }
 0x354   : > { %v1283_v44 = vadd.f32 1e-06, %v1267_v3  ;;  %v1282_v10 = vadd.f32 1e-06, %v1266_v9  ;;  %v1353_v46 = vsel %vm917_vm7, %v1331_v57, 0.0  ;;  %v1306_v45 = vmul.f32 %v2571_v42, %v3488_v31 }
 0x355   : > { %1354 = vadd.xlane.f32.xlu1 %v1353_v46  ;;  %v1249_v19 = vpop.xlane.xlu1 %1248  ;;  %v1344_v7 = vsel %vm917_vm7, %v1328_v52, 0.0  ;;  %v1246_v28 = vpop.xlane.xlu0 %1245 }
 0x356   : > { %2584 = vrsqrt.f32 %v1283_v44  ;;  %v1269_v61 = vmul.f32 0.03125, %v1249_v19  ;;  %1345 = vadd.xlane.f32.xlu0 %v1344_v7  ;;  %v1268_v34 = vmul.f32 0.03125, %v1246_v28  ;;  %v1330_v11 = vmul.f32 %v3570_v63, %v1306_v45 }
 0x357   : > { %v2573_v2 = vpop.eup %2572  ;;  %2586 = vrsqrt.f32 %v1282_v10  ;;  %v1409_v28 = vlaneseq }
 0x358   : > { %v2575_v0 = vpop.eup %2574  ;;  %v1285_v54 = vadd.f32 1e-06, %v1269_v61  ;;  %v1284_v4 = vadd.f32 1e-06, %v1268_v34  ;;  %v1350_v60 = vsel %vm917_vm7, %v1330_v11, 0.0  ;;  %v1309_v31 = vmul.f32 %v2573_v2, %v3498_v32 }
 0x359   : > { %v1255_v18 = vpop.xlane.xlu1 %1254  ;;  %v1252_v50 = vpop.xlane.xlu0 %1251  ;;  %v1308_v62 = vmul.f32 %v2575_v0, %v3493_v59  ;;  %v3620_v61 = vshrl.u32 %v1409_v28, 7  ;;  %v3624_v34 = vstv %s1320_s21 }
 0x35a   : > { %2588 = vrsqrt.f32 %v1285_v54  ;;  %v1271_v40 = vmul.f32 0.03125, %v1255_v18  ;;  %1351 = vadd.xlane.f32.xlu0 %v1350_v60  ;;  %v1270_v53 = vmul.f32 0.03125, %v1252_v50  ;;  %v1333_v26 = vmul.f32 %v3570_v63, %v1309_v31 }
 0x35b   : > { %v2577_v58 = vpop.eup %2576  ;;  %2590 = vrsqrt.f32 %v1284_v4  ;;  %v1332_v16 = vmul.f32 %v3570_v63, %v1308_v62 }
 0x35c   : > { %v2579_v5 = vpop.eup %2578  ;;  %v1287_v20 = vadd.f32 1e-06, %v1271_v40  ;;  %v1286_v33 = vadd.f32 1e-06, %v1270_v53  ;;  %v1359_v37 = vsel %vm917_vm7, %v1333_v26, 0.0  ;;  %v1311_v32 = vmul.f32 %v2577_v58, %v3510_v29 }
 0x35d   : > { %1360 = vadd.xlane.f32.xlu1 %v1359_v37  ;;  %v1356_v59 = vsel %vm917_vm7, %v1332_v16, 0.0  ;;  %v1310_v27 = vmul.f32 %v2579_v5, %v3504_v15 }
 0x35e   : > { %2592 = vrsqrt.f32 %v1287_v20  ;;  %1357 = vadd.xlane.f32.xlu0 %v1356_v59  ;;  %v1335_v35 = vmul.f32 %v3570_v63, %v1311_v32 }
 0x35f   : > { %v2581_v30 = vpop.eup %2580  ;;  %2594 = vrsqrt.f32 %v1286_v33  ;;  %v1334_v38 = vmul.f32 %v3570_v63, %v1310_v27 }
 0x360   : > { %v2583_v25 = vpop.eup %2582  ;;  %v1365_v1 = vsel %vm917_vm7, %v1335_v35, 0.0  ;;  %v1313_v55 = vmul.f32 %v2581_v30, %v3522_v41 }
 0x361   : > { %1366 = vadd.xlane.f32.xlu1 %v1365_v1  ;;  %v1362_v29 = vsel %vm917_vm7, %v1334_v38, 0.0  ;;  %v1312_v22 = vmul.f32 %v2583_v25, %v3516_v13 }
 0x362   : > { %1363 = vadd.xlane.f32.xlu0 %v1362_v29  ;;  %v1337_v15 = vmul.f32 %v3570_v63, %v1313_v55 }
 0x363   : > { %v2585_v21 = vpop.eup %2584  ;;  %v1336_v51 = vmul.f32 %v3570_v63, %v1312_v22 }
 0x364   : > { %v2587_v47 = vpop.eup %2586  ;;  %v1371_v23 = vsel %vm917_vm7, %v1337_v15, 0.0  ;;  %v1315_v56 = vmul.f32 %v2585_v21, %v3534_v14 }
 0x365   : > { %1372 = vadd.xlane.f32.xlu1 %v1371_v23  ;;  %v1368_v8 = vsel %vm917_vm7, %v1336_v51, 0.0  ;;  %v1314_v41 = vmul.f32 %v2587_v47, %v3528_v48 }
 0x366   : > { %1369 = vadd.xlane.f32.xlu0 %v1368_v8  ;;  %v1339_v36 = vmul.f32 %v3570_v63, %v1315_v56 }
 0x367   : > { %v2589_v13 = vpop.eup %2588  ;;  %v1338_v39 = vmul.f32 %v3570_v63, %v1314_v41 }
 0x368   : > { %v2591_v12 = vpop.eup %2590  ;;  %v1377_v49 = vsel %vm917_vm7, %v1339_v36, 0.0  ;;  %v1317_v3 = vmul.f32 %v2589_v13, %v3546_v17 }
 0x369   : > { %1378 = vadd.xlane.f32.xlu1 %v1377_v49  ;;  %v1374_v9 = vsel %vm917_vm7, %v1338_v39, 0.0  ;;  %v1316_v14 = vmul.f32 %v2591_v12, %v3540_v24 }
 0x36a   : > { %1375 = vadd.xlane.f32.xlu0 %v1374_v9  ;;  %v1341_v57 = vmul.f32 %v3570_v63, %v1317_v3 }
 0x36b   : > { %v2593_v48 = vpop.eup %2592  ;;  %v1340_v42 = vmul.f32 %v3570_v63, %v1316_v14 }
 0x36c   : > { %v2595_v52 = vpop.eup %2594  ;;  %v1383_v44 = vsel %vm917_vm7, %v1341_v57, 0.0  ;;  %v1319_v10 = vmul.f32 %v2593_v48, %v3557_v6  ;;  %v3622_v6 = vand.u32 127, %v1409_v28 }
 0x36d   : > { %1384 = vadd.xlane.f32.xlu1 %v1383_v44  ;;  %v1380_v46 = vsel %vm917_vm7, %v1340_v42, 0.0  ;;  %v1318_v17 = vmul.f32 %v2595_v52, %v3552_v43 }
 0x36e   : > { %1381 = vadd.xlane.f32.xlu0 %v1380_v46  ;;  %v1343_v45 = vmul.f32 %v3570_v63, %v1319_v10  ;;  %vm3628_vm1 = vcmp.eq.s32.totalorder %v3620_v61, %v3622_v6  ;;  %vm3671_vm3 = vcmp.lt.s32.totalorder %v3622_v6, %v3620_v61  ;;  %vm1414_vm4 = vcmp.lt.s32.totalorder %v3622_v6, 8 }
 0x36f   : > { %v1342_v24 = vmul.f32 %v3570_v63, %v1318_v17  ;;  %vm1529_vm6 = vmxor %vm3628_vm1, %vm2754_vm5 }
 0x370   : > { %v1389_v19 = vsel %vm917_vm7, %v1343_v45, 0.0  ;;  %vm3707_vm9 = vmand %vm1414_vm4, %vm1529_vm6 }
 0x371   : > { %1390 = vadd.xlane.f32.xlu1 %v1389_v19  ;;  %v1386_v7 = vsel %vm917_vm7, %v1342_v24, 0.0 }
 0x372   : > { %1387 = vadd.xlane.f32.xlu0 %v1386_v7 }
 0x3da   : > { %v1349_v63 = vpop.xlane.xlu1 %1348 }
 0x3db   : > { %v3633_v11 = vadd.f32 %v3624_v34, %v1349_v63 }
 0x3dd   : > { %v1418_v2 = vsel %vm3628_vm1, %v3633_v11, 0.0 }
 0x3de   : > { %v1439_v0 = vrot.slane %v1418_v2, 4  ;;  %v1355_v54 = vpop.xlane.xlu1 %1354 }
 0x3df   : > { %v3639_v4 = vadd.f32 %v3624_v34, %v1355_v54  ;;  %v1346_v60 = vpop.xlane.xlu0 %1345 }
 0x3e0   : > { %v1440_v31 = vadd.f32 %v1439_v0, %v1418_v2  ;;  %v3642_v18 = vadd.f32 %v3624_v34, %v1346_v60 }
 0x3e1   : > { %v1420_v50 = vsel %vm3628_vm1, %v3639_v4, 0.0 }
 0x3e2   : > { %v1441_v62 = vrot.slane %v1440_v31, 2  ;;  %v1451_v40 = vrot.slane %v1420_v50, 4  ;;  %v1417_v53 = vsel %vm3628_vm1, %v3642_v18, 0.0 }
 0x3e3   : > { %v1433_v26 = vrot.slane %v1417_v53, 4  ;;  %v1352_v58 = vpop.xlane.xlu0 %1351 }
 0x3e4   : > { %v1442_v16 = vadd.f32 %v1441_v62, %v1440_v31  ;;  %v1452_v5 = vadd.f32 %v1451_v40, %v1420_v50  ;;  %v3651_v20 = vadd.f32 %v3624_v34, %v1352_v58 }
 0x3e5   : > { %v1434_v33 = vadd.f32 %v1433_v26, %v1417_v53 }
 0x3e6   : > { %v1443_v37 = vrot.slane %v1442_v16, 1  ;;  %v1453_v32 = vrot.slane %v1452_v5, 2  ;;  %v1419_v59 = vsel %vm3628_vm1, %v3651_v20, 0.0  ;;  %v1361_v27 = vpop.xlane.xlu1 %1360 }
 0x3e7   : > { %v1435_v35 = vrot.slane %v1434_v33, 2  ;;  %v1445_v30 = vrot.slane %v1419_v59, 4  ;;  %v3657_v38 = vadd.f32 %v3624_v34, %v1361_v27  ;;  %v1358_v25 = vpop.xlane.xlu0 %1357 }
 0x3e8   : > { %v3659_v1 = vadd.f32 %v1443_v37, %v1442_v16  ;;  %v3662_v55 = vadd.f32 %v3624_v34, %v1358_v25  ;;  %v1454_v21 = vadd.f32 %v1453_v32, %v1452_v5 }
 0x3e9   : > { %v1436_v29 = vadd.f32 %v1435_v35, %v1434_v33  ;;  %v1446_v22 = vadd.f32 %v1445_v30, %v1419_v59  ;;  %v1422_v15 = vsel %vm3628_vm1, %v3657_v38, 0.0  ;;  %v2755_v33 = vmov 0  }
 0x3ea   : > { %vm1548_vm2 = vcmp.eq.f32.partialorder %v3659_v1, %v3633_v11  ;;  %v1463_v51 = vrot.slane %v1422_v15, 4  ;;  %v1367_v47 = vpop.xlane.xlu1 %1366  ;;  %v1421_v41 = vsel %vm3628_vm1, %v3662_v55, 0.0  ;;  %vm1532_vm7 = vcmp.lt.f32.partialorder %v3659_v1, %v3633_v11 }
 0x3eb   : > { %v1437_v56 = vrot.slane %v1436_v29, 1  ;;  %v1447_v8 = vrot.slane %v1446_v22, 2  ;;  %v3679_v36 = vadd.f32 %v3624_v34, %v1367_v47  ;;  %v1364_v13 = vpop.xlane.xlu0 %1363  ;;  %v1457_v12 = vrot.slane %v1421_v41, 4  ;;  %vm1567_vm8 = vmand %vm1548_vm2, %vm3671_vm3 }
 0x3ec   : > { %v1464_v39 = vadd.f32 %v1463_v51, %v1422_v15  ;;  %v3682_v49 = vadd.f32 %v3624_v34, %v1364_v13  ;;  %v1455_v14 = vrot.slane %v1454_v21, 1  ;;  %vm3717_vm10 = vmor %vm1532_vm7, %vm1567_vm8 }
 0x3ed   : > { %v1424_v3 = vsel %vm3628_vm1, %v3679_v36, 0.0  ;;  %v3697_v57 = vadd.f32 %v1437_v56, %v1436_v29  ;;  %v1448_v48 = vadd.f32 %v1447_v8, %v1446_v22  ;;  %v1458_v10 = vadd.f32 %v1457_v12, %v1421_v41  ;;  %vm1601_vm12 = vmand %vm3707_vm9, %vm3717_vm10 }
 0x3ee   : > { %v1373_v9 = vpop.xlane.xlu1 %1372  ;;  %v1475_v42 = vrot.slane %v1424_v3, 4  ;;  %v1465_v44 = vrot.slane %v1464_v39, 2  ;;  %v1423_v46 = vsel %vm3628_vm1, %v3682_v49, 0.0  ;;  %v3724_v0 = vadd.f32 %v1455_v14, %v1454_v21 }
 0x3ef   : > { %v1370_v52 = vpop.xlane.xlu0 %1369  ;;  %v3703_v17 = vadd.f32 %v3624_v34, %v1373_v9  ;;  %v1469_v19 = vrot.slane %v1423_v46, 4  ;;  %vm1547_vm11 = vcmp.eq.f32.partialorder %v3697_v57, %v3642_v18  ;;  %v1449_v54 = vrot.slane %v1448_v48, 1 }
 0x3f0   : > { %v1476_v24 = vadd.f32 %v1475_v42, %v1424_v3  ;;  %v3712_v7 = vadd.f32 %v3624_v34, %v1370_v52  ;;  %v1466_v60 = vadd.f32 %v1465_v44, %v1464_v39  ;;  %v1459_v31 = vrot.slane %v1458_v10, 2  ;;  %vm1566_vm14 = vmand %vm1547_vm11, %vm3671_vm3 }
 0x3f1   : > { %v1426_v63 = vsel %vm3628_vm1, %v3703_v17, 0.0  ;;  %v1470_v40 = vadd.f32 %v1469_v19, %v1423_v46  ;;  %vm1531_vm13 = vcmp.lt.f32.partialorder %v3697_v57, %v3642_v18  ;;  %v3740_v16 = vadd.f32 %v1449_v54, %v1448_v48 }
 0x3f2   : > { %v1379_v2 = vpop.xlane.xlu1 %1378  ;;  %v1487_v50 = vrot.slane %v1426_v63, 4  ;;  %v1425_v11 = vsel %vm3628_vm1, %v3712_v7, 0.0  ;;  %v1477_v62 = vrot.slane %v1476_v24, 2  ;;  %v1617_v37 = vsel %vm1601_vm12, 1, %v2755_v33  ;;  %vm3759_vm0 = vmor %vm1531_vm13, %vm1566_vm14 }
 0x3f3   : > { %v3736_v53 = vadd.f32 %v3624_v34, %v1379_v2  ;;  %v1376_v26 = vpop.xlane.xlu0 %1375  ;;  %v1481_v58 = vrot.slane %v1425_v11, 4  ;;  %vm1550_vm15 = vcmp.eq.f32.partialorder %v3724_v0, %v3639_v4  ;;  %v1467_v32 = vrot.slane %v1466_v60, 1  ;;  %vm1600_vm7 = vmand %vm3707_vm9, %vm3759_vm0 }
 0x3f4   : > { %v1488_v5 = vadd.f32 %v1487_v50, %v1426_v63  ;;  %v1460_v59 = vadd.f32 %v1459_v31, %v1458_v10  ;;  %v1478_v27 = vadd.f32 %v1477_v62, %v1476_v24  ;;  %v1471_v35 = vrot.slane %v1470_v40, 2  ;;  %vm1569_vm6 = vmand %vm1550_vm15, %vm3671_vm3 }
 0x3f5   : > { %v1428_v30 = vsel %vm3628_vm1, %v3736_v53, 0.0  ;;  %v1482_v25 = vadd.f32 %v1481_v58, %v1425_v11  ;;  %v3754_v29 = vadd.f32 %v3624_v34, %v1376_v26  ;;  %v1645_v22 = vshrl.u32 %v1617_v37, 16 }
 0x3f6   : > { %vm1534_vm2 = vcmp.lt.f32.partialorder %v3724_v0, %v3639_v4  ;;  %vm1549_vm5 = vcmp.eq.f32.partialorder %v3740_v16, %v3651_v20  ;;  %v1489_v21 = vrot.slane %v1488_v5, 2  ;;  %v1385_v51 = vpop.xlane.xlu1 %1384  ;;  %v3772_v18 = vadd.f32 %v1467_v32, %v1466_v60 }
 0x3f7   : > { %v1382_v47 = vpop.xlane.xlu0 %1381  ;;  %v1461_v56 = vrot.slane %v1460_v59, 1  ;;  %v1499_v8 = vrot.slane %v1428_v30, 4  ;;  %v1647_v41 = vcvt.s32.f32 %v1645_v22  ;;  %v1479_v13 = vrot.slane %v1478_v27, 1  ;;  %vm3787_vm8 = vmor %vm1534_vm2, %vm1569_vm6 }
 0x3f8   : > { %v1472_v39 = vadd.f32 %v1471_v35, %v1470_v40  ;;  %v1483_v12 = vrot.slane %v1482_v25, 2  ;;  %v1427_v3 = vsel %vm3628_vm1, %v3754_v29, 0.0  ;;  %v3782_v9 = vadd.f32 %v3624_v34, %v1385_v51  ;;  %vm1568_vm11 = vmand %vm1549_vm5, %vm3671_vm3 }
 0x3f9   : > { %1650 = vadd.xlane.f32.xlu1 %v1647_v41  ;;  %vm1533_vm10 = vcmp.lt.f32.partialorder %v3740_v16, %v3651_v20  ;;  %v1490_v48 = vadd.f32 %v1489_v21, %v1488_v5  ;;  %v1644_v42 = vand.u32 65535, %v1617_v37  ;;  %vm1552_vm12 = vcmp.eq.f32.partialorder %v3772_v18, %v3657_v38  ;;  %vm1603_vm13 = vmand %vm3707_vm9, %vm3787_vm8 }
 0x3fa   : > { %v3800_v52 = vadd.f32 %v1461_v56, %v1460_v59  ;;  %v1500_v4 = vadd.f32 %v1499_v8, %v1428_v30  ;;  %v3802_v44 = vadd.f32 %v1479_v13, %v1478_v27  ;;  %v1473_v10 = vrot.slane %v1472_v39, 1  ;;  %vm3820_vm14 = vmor %vm1533_vm10, %vm1568_vm11  ;;  %v1391_v5 = vpop.xlane.xlu1 %1390 }
 0x3fb   : > { %v1493_v46 = vrot.slane %v1427_v3, 4  ;;  %v1388_v24 = vpop.xlane.xlu0 %1387  ;;  %v1484_v19 = vadd.f32 %v1483_v12, %v1482_v25  ;;  %v1430_v28 = vsel %vm3628_vm1, %v3782_v9, 0.0  ;;  %v1646_v63 = vcvt.s32.f32 %v1644_v42  ;;  %vm3834_vm0 = vmand %vm1552_vm12, %vm3671_vm3 }
 0x3fc   : > { %v1616_v2 = vsel %vm1600_vm7, 1, %v2755_v33  ;;  %vm1536_vm15 = vcmp.lt.f32.partialorder %v3772_v18, %v3657_v38  ;;  %v1491_v60 = vrot.slane %v1490_v48, 1  ;;  %v3827_v31 = vadd.f32 %v3624_v34, %v1382_v47  ;;  %vm1602_vm7 = vmand %vm3707_vm9, %vm3820_vm14 }
 0x3fd   : > { %v1633_v50 = vshrl.u32 %v1616_v2, 16  ;;  %vm1535_vm2 = vcmp.lt.f32.partialorder %v3800_v52, %v3662_v55  ;;  %vm1551_vm5 = vcmp.eq.f32.partialorder %v3800_v52, %v3662_v55  ;;  %v1501_v20 = vrot.slane %v1500_v4, 2  ;;  %1648 = vadd.xlane.f32.xlu1 %v1646_v63  ;;  %vm3867_vm10 = vmor %vm1536_vm15, %vm3834_vm0 }
 0x3fe   : > { %v3843_v62 = vadd.f32 %v3624_v34, %v1388_v24  ;;  %vm1554_vm6 = vcmp.eq.f32.partialorder %v3802_v44, %v3679_v36  ;;  %v1494_v40 = vadd.f32 %v1493_v46, %v1427_v3  ;;  %v1511_v26 = vrot.slane %v1430_v28, 4  ;;  %vm1570_vm8 = vmand %vm1551_vm5, %vm3671_vm3 }
 0x3ff   : > { %v1635_v58 = vcvt.s32.f32 %v1633_v50  ;;  %v3851_v37 = vadd.f32 %v1473_v10, %v1472_v39  ;;  %v1485_v32 = vrot.slane %v1484_v19, 1  ;;  %v1619_v27 = vsel %vm1603_vm13, 1, %v2755_v33  ;;  %vm1573_vm12 = vmand %vm1554_vm6, %vm3671_vm3 }
 0x400   : > { %v1431_v59 = vsel %vm3628_vm1, %v3843_v62, 0.0  ;;  %v3871_v30 = vadd.f32 %v1491_v60, %v1490_v48  ;;  %v1429_v25 = vsel %vm3628_vm1, %v3827_v31, 0.0  ;;  %v1669_v15 = vshrl.u32 %v1619_v27, 16  ;;  %vm1605_vm13 = vmand %vm3707_vm9, %vm3867_vm10 }
 0x401   : > { %1638 = vadd.xlane.f32.xlu0 %v1635_v58  ;;  %v1517_v22 = vrot.slane %v1431_v59, 4  ;;  %vm1538_vm11 = vcmp.lt.f32.partialorder %v3802_v44, %v3679_v36  ;;  %v1502_v38 = vadd.f32 %v1501_v20, %v1500_v4  ;;  %v3884_v21 = vadd.f32 %v3624_v34, %v1391_v5  ;;  %vm3898_vm15 = vmor %vm1535_vm2, %vm1570_vm8 }
 0x402   : > { %v1632_v51 = vand.u32 65535, %v1616_v2  ;;  %v1495_v47 = vrot.slane %v1494_v40, 2  ;;  %v1512_v56 = vadd.f32 %v1511_v26, %v1430_v28  ;;  %v1505_v41 = vrot.slane %v1429_v25, 4  ;;  %vm3911_vm6 = vmor %vm1538_vm11, %vm1573_vm12 }
 0x403   : > { %v1518_v8 = vadd.f32 %v1517_v22, %v1431_v59  ;;  %v1671_v13 = vcvt.s32.f32 %v1669_v15  ;;  %v1668_v34 = vand.u32 65535, %v1619_v27  ;;  %vm1553_vm0 = vcmp.eq.f32.partialorder %v3851_v37, %v3682_v49  ;;  %vm1607_vm2 = vmand %vm3707_vm9, %vm3911_vm6 }
 0x404   : > { %v1634_v39 = vcvt.s32.f32 %v1632_v51  ;;  %vm1556_vm5 = vcmp.eq.f32.partialorder %v3871_v30, %v3703_v17  ;;  %v3906_v3 = vadd.f32 %v1485_v32, %v1484_v19  ;;  %v1503_v55 = vrot.slane %v1502_v38, 1 }
 0x405   : > { %v1519_v14 = vrot.slane %v1518_v8, 2  ;;  %v1432_v42 = vsel %vm3628_vm1, %v3884_v21, 0.0  ;;  %1674 = vadd.xlane.f32.xlu1 %v1671_v13  ;;  %v1618_v4 = vsel %vm1602_vm7, 1, %v2755_v33  ;;  %v1621_v36 = vsel %vm1605_vm13, 1, %v2755_v33  ;;  %vm1604_vm1 = vmand %vm3707_vm9, %vm3898_vm15 }
 0x406   : > { %1636 = vadd.xlane.f32.xlu0 %v1634_v39  ;;  %v1496_v10 = vadd.f32 %v1495_v47, %v1494_v40  ;;  %v1513_v46 = vrot.slane %v1512_v56, 2  ;;  %v1657_v24 = vshrl.u32 %v1618_v4, 16  ;;  %vm1537_vm14 = vcmp.lt.f32.partialorder %v3851_v37, %v3682_v49  ;;  %vm1572_vm7 = vmand %vm1553_vm0, %vm3671_vm3 }
 0x407   : > { %v1520_v43 = vadd.f32 %v1519_v14, %v1518_v8  ;;  %v1506_v19 = vadd.f32 %v1505_v41, %v1429_v25  ;;  %v1670_v28 = vcvt.s32.f32 %v1668_v34  ;;  %v1693_v63 = vshrl.u32 %v1621_v36, 16  ;;  %vm3953_vm8 = vmand %vm1556_vm5, %vm3671_vm3 }
 0x408   : > { %v1523_v2 = vrot.slane %v1432_v42, 4  ;;  %v1659_v60 = vcvt.s32.f32 %v1657_v24  ;;  %v1656_v50 = vand.u32 65535, %v1618_v4  ;;  %vm1540_vm10 = vcmp.lt.f32.partialorder %v3871_v30, %v3703_v17  ;;  %vm3966_vm12 = vmor %vm1537_vm14, %vm1572_vm7 }
 0x409   : > { %v1521_v54 = vrot.slane %v1520_v43, 1  ;;  %1672 = vadd.xlane.f32.xlu1 %v1670_v28  ;;  %v1620_v11 = vsel %vm1604_vm1, 1, %v2755_v33  ;;  %vm1555_vm11 = vcmp.eq.f32.partialorder %v3906_v3, %v3712_v7  ;;  %v3959_v40 = vadd.f32 %v1503_v55, %v1502_v38  ;;  %vm3981_vm13 = vmor %vm1540_vm10, %vm3953_vm8 }
 0x40a   : > { %v1497_v26 = vrot.slane %v1496_v10, 1  ;;  %v1514_v58 = vadd.f32 %v1513_v46, %v1512_v56  ;;  %1662 = vadd.xlane.f32.xlu0 %v1659_v60  ;;  %v1507_v5 = vrot.slane %v1506_v19, 2  ;;  %v1695_v59 = vcvt.s32.f32 %v1693_v63  ;;  %vm3992_vm0 = vmand %vm1555_vm11, %vm3671_vm3 }
 0x40b   : > { %v3961_v32 = vadd.f32 %v1521_v54, %v1520_v43  ;;  %v1692_v27 = vand.u32 65535, %v1621_v36  ;;  %v1524_v25 = vadd.f32 %v1523_v2, %v1432_v42  ;;  %v1658_v22 = vcvt.s32.f32 %v1656_v50  ;;  %vm1606_vm6 = vmand %vm3707_vm9, %vm3966_vm12 }
 0x40c   : > { %v1681_v15 = vshrl.u32 %v1620_v11, 16  ;;  %v1623_v38 = vsel %vm1607_vm2, 1, %v2755_v33  ;;  %vm1539_vm15 = vcmp.lt.f32.partialorder %v3906_v3, %v3712_v7  ;;  %vm1558_vm5 = vcmp.eq.f32.partialorder %v3959_v40, %v3736_v53  ;;  %vm1609_vm14 = vmand %vm3707_vm9, %vm3981_vm13 }
 0x40d   : > { %1698 = vadd.xlane.f32.xlu1 %v1695_v59  ;;  %v3998_v17 = vadd.f32 %v1497_v26, %v1496_v10  ;;  %v1515_v47 = vrot.slane %v1514_v58, 1  ;;  %v1508_v56 = vadd.f32 %v1507_v5, %v1506_v19  ;;  %vm1561_vm1 = vcmp.eq.f32.partialorder %v3961_v32, %v3843_v62  ;;  %vm4017_vm7 = vmor %vm1539_vm15, %vm3992_vm0 }
 0x40e   : > { %1660 = vadd.xlane.f32.xlu0 %v1658_v22  ;;  %v1694_v8 = vcvt.s32.f32 %v1692_v27  ;;  %v1717_v41 = vshrl.u32 %v1623_v38, 16  ;;  %v1525_v13 = vrot.slane %v1524_v25, 2  ;;  %vm1545_vm2 = vcmp.lt.f32.partialorder %v3961_v32, %v3843_v62  ;;  %vm4027_vm10 = vmand %vm1558_vm5, %vm3671_vm3 }
 0x40f   : > { %v1683_v39 = vcvt.s32.f32 %v1681_v15  ;;  %v1680_v34 = vand.u32 65535, %v1620_v11  ;;  %v1622_v14 = vsel %vm1606_vm6, 1, %v2755_v33  ;;  %vm1542_vm8 = vcmp.lt.f32.partialorder %v3959_v40, %v3736_v53  ;;  %vm1580_vm12 = vmand %vm1561_vm1, %vm3671_vm3 }
 0x410   : > { %vm1557_vm11 = vcmp.eq.f32.partialorder %v3998_v17, %v3754_v29  ;;  %v4040_v7 = vadd.f32 %v1515_v47, %v1514_v58  ;;  %v1509_v55 = vrot.slane %v1508_v56, 1  ;;  %v1719_v42 = vcvt.s32.f32 %v1717_v41  ;;  %vm1596_vm15 = vmor %vm1545_vm2, %vm1580_vm12 }
 0x411   : > { %1696 = vadd.xlane.f32.xlu1 %v1694_v8  ;;  %v1716_v4 = vand.u32 65535, %v1623_v38  ;;  %v1526_v36 = vadd.f32 %v1525_v13, %v1524_v25  ;;  %v1682_v10 = vcvt.s32.f32 %v1680_v34  ;;  %v1705_v46 = vshrl.u32 %v1622_v14, 16  ;;  %vm1614_vm0 = vmand %vm3707_vm9, %vm1596_vm15 }
 0x412   : > { %1686 = vadd.xlane.f32.xlu0 %v1683_v39  ;;  %v1625_v43 = vsel %vm1609_vm14, 1, %v2755_v33  ;;  %vm1608_vm5 = vmand %vm3707_vm9, %vm4017_vm7  ;;  %v4067_v24 = vsel %vm1614_vm0, 1, %v2755_v33  ;;  %vm1541_vm13 = vcmp.lt.f32.partialorder %v3998_v17, %v3754_v29  ;;  %v4071_v19 = vadd.f32 %v1509_v55, %v1508_v56 }
 0x413   : > { %vm4062_vm6 = vmor %vm1542_vm8, %vm4027_vm10  ;;  %v1718_v28 = vcvt.s32.f32 %v1716_v4  ;;  %v1741_v63 = vshrl.u32 %v1625_v43, 16  ;;  %vm1560_vm14 = vcmp.eq.f32.partialorder %v4040_v7, %v3782_v9  ;;  %v1527_v53 = vrot.slane %v1526_v36, 1 }
 0x414   : > { %vm1576_vm1 = vmand %vm1557_vm11, %vm3671_vm3  ;;  %v1707_v2 = vcvt.s32.f32 %v1705_v46  ;;  %v1704_v54 = vand.u32 65535, %v1622_v14  ;;  %v1624_v60 = vsel %vm1608_vm5, 1, %v2755_v33  ;;  %vm1544_vm10 = vcmp.lt.f32.partialorder %v4040_v7, %v3782_v9 }
 0x415   : > { %1722 = vadd.xlane.f32.xlu1 %v1719_v42  ;;  %vm1611_vm2 = vmand %vm3707_vm9, %vm4062_vm6  ;;  %vm1559_vm8 = vcmp.eq.f32.partialorder %v4071_v19, %v3827_v31  ;;  %v1743_v29 = vcvt.s32.f32 %v1741_v63  ;;  %v1740_v11 = vand.u32 65535, %v1625_v43  ;;  %v4095_v20 = vadd.f32 %v1527_v53, %v1526_v36 }
 0x416   : > { %1684 = vadd.xlane.f32.xlu0 %v1682_v10  ;;  %vm4085_vm7 = vmor %vm1541_vm13, %vm1576_vm1  ;;  %v1706_v26 = vcvt.s32.f32 %v1704_v54  ;;  %v1729_v58 = vshrl.u32 %v1624_v60, 16  ;;  %v1627_v5 = vsel %vm1611_vm2, 1, %v2755_v33  ;;  %vm1543_vm0 = vcmp.lt.f32.partialorder %v4071_v19, %v3827_v31 }
 0x417   : > { %vm1579_vm11 = vmand %vm1560_vm14, %vm3671_vm3  ;;  %v1742_v59 = vcvt.s32.f32 %v1740_v11  ;;  %v1765_v27 = vshrl.u32 %v1627_v5, 16  ;;  %vm1562_vm6 = vcmp.eq.f32.partialorder %v4095_v20, %v3884_v21  ;;  %v1728_v25 = vand.u32 65535, %v1624_v60 }
 0x418   : > { %vm1610_vm12 = vmand %vm3707_vm9, %vm4085_vm7  ;;  %v1731_v35 = vcvt.s32.f32 %v1729_v58  ;;  %vm1546_vm14 = vcmp.lt.f32.partialorder %v4095_v20, %v3884_v21  ;;  %v1764_v38 = vand.u32 65535, %v1627_v5  ;;  %v1801_v45 = vshrl.u32 %v4067_v24, 16 }
 0x419   : > { %1720 = vadd.xlane.f32.xlu1 %v1718_v28  ;;  %vm4102_vm15 = vmor %vm1544_vm10, %vm1579_vm11  ;;  %v1626_v22 = vsel %vm1610_vm12, 1, %v2755_v33  ;;  %v1767_v31 = vcvt.s32.f32 %v1765_v27  ;;  %v1730_v49 = vcvt.s32.f32 %v1728_v25  ;;  %v1800_v28 = vand.u32 65535, %v4067_v24 }
 0x41a   : > { %1710 = vadd.xlane.f32.xlu0 %v1707_v2  ;;  %vm1578_vm5 = vmand %vm1559_vm8, %vm3671_vm3  ;;  %v1753_v51 = vshrl.u32 %v1626_v22, 16  ;;  %v1766_v56 = vcvt.s32.f32 %v1764_v38  ;;  %v1752_v41 = vand.u32 65535, %v1626_v22  ;;  %v1803_v62 = vcvt.s32.f32 %v1801_v45 }
 0x41b   : > { %vm1613_vm13 = vmand %vm3707_vm9, %vm4102_vm15 }
 0x41c   : > { %vm4120_vm1 = vmor %vm1543_vm0, %vm1578_vm5  ;;  %v1629_v47 = vsel %vm1613_vm13, 1, %v2755_v33  ;;  %v1755_v21 = vcvt.s32.f32 %v1753_v51  ;;  %v1754_v34 = vcvt.s32.f32 %v1752_v41 }
 0x41d   : > { %1746 = vadd.xlane.f32.xlu1 %v1743_v29  ;;  %vm1581_vm2 = vmand %vm1562_vm6, %vm3671_vm3  ;;  %v1789_v8 = vshrl.u32 %v1629_v47, 16  ;;  %v1788_v39 = vand.u32 65535, %v1629_v47 }
 0x41e   : > { %1708 = vadd.xlane.f32.xlu0 %v1706_v26  ;;  %vm1612_vm7 = vmand %vm3707_vm9, %vm4120_vm1 }
 0x41f   : > { %vm1597_vm10 = vmor %vm1546_vm14, %vm1581_vm2  ;;  %v1628_v23 = vsel %vm1612_vm7, 1, %v2755_v33  ;;  %v1791_v13 = vcvt.s32.f32 %v1789_v8  ;;  %v1790_v48 = vcvt.s32.f32 %v1788_v39 }
 0x420   : > { %vm1615_vm3 = vmand %vm3707_vm9, %vm1597_vm10  ;;  %v1777_v12 = vshrl.u32 %v1628_v23, 16  ;;  %v1776_v4 = vand.u32 65535, %v1628_v23 }
 0x421   : > { %1744 = vadd.xlane.f32.xlu1 %v1742_v59  ;;  %v1631_v14 = vsel %vm1615_vm3, 1, %v2755_v33  ;;  %v1802_v33 = vcvt.s32.f32 %v1800_v28 }
 0x422   : > { %1734 = vadd.xlane.f32.xlu0 %v1731_v35  ;;  %v1813_v55 = vshrl.u32 %v1631_v14, 16  ;;  %v1779_v42 = vcvt.s32.f32 %v1777_v12  ;;  %v1812_v10 = vand.u32 65535, %v1631_v14  ;;  %v1778_v46 = vcvt.s32.f32 %v1776_v4 }
 0x424   : > { %v1815_v36 = vcvt.s32.f32 %v1813_v55  ;;  %v1814_v43 = vcvt.s32.f32 %v1812_v10 }
 0x425   : > { %1770 = vadd.xlane.f32.xlu1 %v1767_v31 }
 0x426   : > { %1732 = vadd.xlane.f32.xlu0 %v1730_v49 }
 0x429   : > { %1768 = vadd.xlane.f32.xlu1 %v1766_v56 }
 0x42a   : > { %1758 = vadd.xlane.f32.xlu0 %v1755_v21 }
 0x42d   : > { %1794 = vadd.xlane.f32.xlu1 %v1791_v13 }
 0x42e   : > { %1756 = vadd.xlane.f32.xlu0 %v1754_v34 }
 0x431   : > { %1792 = vadd.xlane.f32.xlu1 %v1790_v48 }
 0x432   : > { %1782 = vadd.xlane.f32.xlu0 %v1779_v42 }
 0x435   : > { %1818 = vadd.xlane.f32.xlu1 %v1815_v36 }
 0x436   : > { %1780 = vadd.xlane.f32.xlu0 %v1778_v46 }
 0x439   : > { %1816 = vadd.xlane.f32.xlu1 %v1814_v43 }
 0x43a   : > { %1806 = vadd.xlane.f32.xlu0 %v1803_v62 }
 0x43e   : > { %1804 = vadd.xlane.f32.xlu0 %v1802_v33 }
 0x482   : > { %v1651_v63 = vpop.xlane.xlu1 %1650 }
 0x483   : > { %v1653_v53 = vcvt.f32.s32 %v1651_v63 }
 0x485   : > { %v1654_v54 = vshll.u32 %v1653_v53, 16 }
 0x486   : > { %v1649_v2 = vpop.xlane.xlu1 %1648 }
 0x487   : > { %v1652_v60 = vcvt.f32.s32 %v1649_v2 }
 0x489   : > { %v1655_v50 = vadd.s32 %v1654_v54, %v1652_v60 }
 0x48a   : > { %v1639_v29 = vpop.xlane.xlu0 %1638 }
 0x48b   : > { %vm1825_vm9 = vcmp.eq.s32.totalorder %v1655_v50, %v3622_v6  ;;  %v1641_v11 = vcvt.f32.s32 %v1639_v29 }
 0x48c   : > { %v1841_v26 = vsel %vm1825_vm9, %v3620_v61, 0 }
 0x48d   : > { %v1862_v58 = vrot.slane %v1841_v26, 4  ;;  %v1642_v59 = vshll.u32 %v1641_v11, 16 }
 0x48e   : > { %v1675_v5 = vpop.xlane.xlu1 %1674 }
 0x48f   : > { %v1637_v9 = vpop.xlane.xlu0 %1636  ;;  %v1863_v24 = vadd.s32 %v1862_v58, %v1841_v26  ;;  %v1677_v27 = vcvt.f32.s32 %v1675_v5 }
 0x490   : > { %v1640_v35 = vcvt.f32.s32 %v1637_v9 }
 0x491   : > { %v1864_v25 = vrot.slane %v1863_v24, 2  ;;  %v1678_v38 = vshll.u32 %v1677_v27, 16 }
 0x492   : > { %v1643_v22 = vadd.s32 %v1642_v59, %v1640_v35  ;;  %v1673_v15 = vpop.xlane.xlu1 %1672 }
 0x493   : > { %v1865_v31 = vadd.s32 %v1864_v25, %v1863_v24  ;;  %v1676_v49 = vcvt.f32.s32 %v1673_v15  ;;  %v1663_v51 = vpop.xlane.xlu0 %1662 }
 0x494   : > { %vm1824_vm8 = vcmp.eq.s32.totalorder %v1643_v22, %v3622_v6  ;;  %v1665_v56 = vcvt.f32.s32 %v1663_v51 }
 0x495   : > { %v1840_v47 = vsel %vm1824_vm8, %v3620_v61, 0  ;;  %v1866_v8 = vrot.slane %v1865_v31, 1  ;;  %v1679_v41 = vadd.s32 %v1678_v38, %v1676_v49 }
 0x496   : > { %v1856_v21 = vrot.slane %v1840_v47, 4  ;;  %v1699_v23 = vpop.xlane.xlu1 %1698  ;;  %v1666_v48 = vshll.u32 %v1665_v56, 16 }
 0x497   : > { %vm1827_vm11 = vcmp.eq.s32.totalorder %v1679_v41, %v3622_v6  ;;  %v1701_v39 = vcvt.f32.s32 %v1699_v23  ;;  %v1661_v34 = vpop.xlane.xlu0 %1660  ;;  %v1867_v12 = vadd.s32 %v1866_v8, %v1865_v31 }
 0x498   : > { %v1857_v13 = vadd.s32 %v1856_v21, %v1840_v47  ;;  %v1843_v14 = vsel %vm1827_vm11, %v3620_v61, 0  ;;  %v1664_v55 = vcvt.f32.s32 %v1661_v34 }
 0x499   : > { %v1874_v4 = vrot.slane %v1843_v14, 4  ;;  %v1953_v36 = vcvt.s32.f32 %v1867_v12  ;;  %v1702_v10 = vshll.u32 %v1701_v39, 16 }
 0x49a   : > { %v1858_v42 = vrot.slane %v1857_v13, 2  ;;  %v1667_v46 = vadd.s32 %v1666_v48, %v1664_v55  ;;  %v1697_v45 = vpop.xlane.xlu1 %1696 }
 0x49b   : > { %v1875_v62 = vadd.s32 %v1874_v4, %v1843_v14  ;;  %v1700_v28 = vcvt.f32.s32 %v1697_v45  ;;  %v1687_v33 = vpop.xlane.xlu0 %1686  ;;  %v1969_v63 = vadd.f32 1.0, %v1953_v36 }
 0x49c   : > { %v1859_v43 = vadd.s32 %v1858_v42, %v1857_v13  ;;  %vm1826_vm12 = vcmp.eq.s32.totalorder %v1667_v46, %v3622_v6  ;;  %v1689_v53 = vcvt.f32.s32 %v1687_v33 }
 0x49d   : > { %v1876_v54 = vrot.slane %v1875_v62, 2  ;;  %v1842_v60 = vsel %vm1826_vm12, %v3620_v61, 0  ;;  %v1703_v50 = vadd.s32 %v1702_v10, %v1700_v28  ;;  %2596 = vlog2.f32 %v1969_v63 }
 0x49e   : > { %v1860_v2 = vrot.slane %v1859_v43, 1  ;;  %v1868_v29 = vrot.slane %v1842_v60, 4  ;;  %v1723_v11 = vpop.xlane.xlu1 %1722  ;;  %v1690_v27 = vshll.u32 %v1689_v53, 16 }
 0x49f   : > { %v1877_v26 = vadd.s32 %v1876_v54, %v1875_v62  ;;  %vm1829_vm15 = vcmp.eq.s32.totalorder %v1703_v50, %v3622_v6  ;;  %v1725_v58 = vcvt.f32.s32 %v1723_v11  ;;  %v1685_v5 = vpop.xlane.xlu0 %1684 }
 0x4a0   : > { %v1861_v9 = vadd.s32 %v1860_v2, %v1859_v43  ;;  %v1869_v24 = vadd.s32 %v1868_v29, %v1842_v60  ;;  %v1845_v59 = vsel %vm1829_vm15, %v3620_v61, 0  ;;  %v1688_v35 = vcvt.f32.s32 %v1685_v5 }
 0x4a1   : > { %v1878_v25 = vrot.slane %v1877_v26, 1  ;;  %v1886_v22 = vrot.slane %v1845_v59, 4  ;;  %v1726_v38 = vshll.u32 %v1725_v58, 16 }
 0x4a2   : > { %v1952_v15 = vcvt.s32.f32 %v1861_v9  ;;  %v1870_v31 = vrot.slane %v1869_v24, 2  ;;  %v1691_v49 = vadd.s32 %v1690_v27, %v1688_v35  ;;  %v1721_v51 = vpop.xlane.xlu1 %1720 }
 0x4a3   : > { %v1887_v47 = vadd.s32 %v1886_v22, %v1845_v59  ;;  %v1724_v56 = vcvt.f32.s32 %v1721_v51  ;;  %v1711_v8 = vpop.xlane.xlu0 %1710  ;;  %v1879_v41 = vadd.s32 %v1878_v25, %v1877_v26 }
 0x4a4   : > { %v1968_v21 = vadd.f32 1.0, %v1952_v15  ;;  %v1871_v23 = vadd.s32 %v1870_v31, %v1869_v24  ;;  %vm1828_vm0 = vcmp.eq.s32.totalorder %v1691_v49, %v3622_v6  ;;  %v1713_v13 = vcvt.f32.s32 %v1711_v8 }
 0x4a5   : > { %v1888_v39 = vrot.slane %v1887_v47, 2  ;;  %v1844_v34 = vsel %vm1828_vm0, %v3620_v61, 0  ;;  %v1727_v12 = vadd.s32 %v1726_v38, %v1724_v56  ;;  %v1955_v42 = vcvt.s32.f32 %v1879_v41 }
 0x4a6   : > { %2598 = vlog2.f32 %v1968_v21  ;;  %v1872_v14 = vrot.slane %v1871_v23, 1  ;;  %v1880_v48 = vrot.slane %v1844_v34, 4  ;;  %v1747_v55 = vpop.xlane.xlu1 %1746  ;;  %v1714_v36 = vshll.u32 %v1713_v13, 16 }
 0x4a7   : > { %v1889_v4 = vadd.s32 %v1888_v39, %v1887_v47  ;;  %vm1831_vm5 = vcmp.eq.s32.totalorder %v1727_v12, %v3622_v6  ;;  %v1749_v10 = vcvt.f32.s32 %v1747_v55  ;;  %v1709_v46 = vpop.xlane.xlu0 %1708  ;;  %v1971_v28 = vadd.f32 1.0, %v1955_v42 }
 0x4a8   : > { %v1881_v45 = vadd.s32 %v1880_v48, %v1844_v34  ;;  %v1847_v43 = vsel %vm1831_vm5, %v3620_v61, 0  ;;  %v1712_v62 = vcvt.f32.s32 %v1709_v46  ;;  %v1873_v53 = vadd.s32 %v1872_v14, %v1871_v23 }
 0x4a9   : > { %v1890_v33 = vrot.slane %v1889_v4, 1  ;;  %v1898_v63 = vrot.slane %v1847_v43, 4  ;;  %v1750_v54 = vshll.u32 %v1749_v10, 16  ;;  %2600 = vlog2.f32 %v1971_v28 }
 0x4aa   : > { %v1882_v2 = vrot.slane %v1881_v45, 2  ;;  %v1715_v60 = vadd.s32 %v1714_v36, %v1712_v62  ;;  %v1745_v50 = vpop.xlane.xlu1 %1744  ;;  %v2597_v29 = vpop.eup %2596  ;;  %v1954_v5 = vcvt.s32.f32 %v1873_v53 }
 0x4ab   : > { %v1899_v11 = vadd.s32 %v1898_v63, %v1847_v43  ;;  %v1748_v26 = vcvt.f32.s32 %v1745_v50  ;;  %v1735_v58 = vpop.xlane.xlu0 %1734  ;;  %v1891_v9 = vadd.s32 %v1890_v33, %v1889_v4  ;;  %v1987_v27 = vmul.f32 0.6931472, %v2597_v29 }
 0x4ac   : > { %v1883_v24 = vadd.s32 %v1882_v2, %v1881_v45  ;;  %vm1830_vm6 = vcmp.eq.s32.totalorder %v1715_v60, %v3622_v6  ;;  %v1737_v59 = vcvt.f32.s32 %v1735_v58  ;;  %v1970_v15 = vadd.f32 1.0, %v1954_v5 }
 0x4ad   : > { %v1900_v35 = vrot.slane %v1899_v11, 2  ;;  %v1846_v25 = vsel %vm1830_vm6, %v3620_v61, 0  ;;  %v1751_v22 = vadd.s32 %v1750_v54, %v1748_v26  ;;  %v2017_v47 = vmul.f32 %v1987_v27, %v3659_v1 }
 0x4ae   : > { %v1884_v31 = vrot.slane %v1883_v24, 1  ;;  %v1892_v38 = vrot.slane %v1846_v25, 4  ;;  %v1738_v49 = vshll.u32 %v1737_v59, 16  ;;  %v1771_v51 = vpop.xlane.xlu1 %1770  ;;  %2602 = vlog2.f32 %v1970_v15 }
 0x4af   : > { %v1901_v56 = vadd.s32 %v1900_v35, %v1899_v11  ;;  %vm1833_vm13 = vcmp.eq.s32.totalorder %v1751_v22, %v3622_v6  ;;  %v1773_v8 = vcvt.f32.s32 %v1771_v51  ;;  %v1733_v21 = vpop.xlane.xlu0 %1732  ;;  %v4160_v39 = vsel %vm1414_vm4, %v2017_v47, -inf }
 0x4b0   : > { %v1893_v41 = vadd.s32 %v1892_v38, %v1846_v25  ;;  %v1849_v23 = vsel %vm1833_vm13, %v3620_v61, 0  ;;  %v1736_v13 = vcvt.f32.s32 %v1733_v21  ;;  %2052 = vmax.xlane.f32.xlu1 %v4160_v39  ;;  %v1957_v14 = vcvt.s32.f32 %v1891_v9 }
 0x4b1   : > { %v1902_v34 = vrot.slane %v1901_v56, 1  ;;  %v1910_v12 = vrot.slane %v1849_v23, 4  ;;  %v1774_v55 = vshll.u32 %v1773_v8, 16  ;;  %v1885_v36 = vadd.s32 %v1884_v31, %v1883_v24 }
 0x4b2   : > { %v1894_v48 = vrot.slane %v1893_v41, 2  ;;  %v1739_v42 = vadd.s32 %v1738_v49, %v1736_v13  ;;  %v1769_v4 = vpop.xlane.xlu1 %1768  ;;  %v1973_v62 = vadd.f32 1.0, %v1957_v14 }
 0x4b3   : > { %v2599_v1 = vpop.eup %2598  ;;  %v1911_v10 = vadd.s32 %v1910_v12, %v1849_v23  ;;  %v1772_v46 = vcvt.f32.s32 %v1769_v4  ;;  %v1759_v45 = vpop.xlane.xlu0 %1758  ;;  %v1956_v63 = vcvt.s32.f32 %v1885_v36  ;;  %v1903_v21 = vadd.s32 %v1902_v34, %v1901_v56 }
 0x4b4   : > { %v1985_v43 = vmul.f32 0.6931472, %v2599_v1  ;;  %v1895_v28 = vadd.s32 %v1894_v48, %v1893_v41  ;;  %vm1832_vm1 = vcmp.eq.s32.totalorder %v1739_v42, %v3622_v6  ;;  %v1761_v33 = vcvt.f32.s32 %v1759_v45 }
 0x4b5   : > { %v1912_v53 = vrot.slane %v1911_v10, 2  ;;  %v1848_v2 = vsel %vm1832_vm1, %v3620_v61, 0  ;;  %v1775_v54 = vadd.s32 %v1774_v55, %v1772_v46  ;;  %2604 = vlog2.f32 %v1973_v62 }
 0x4b6   : > { %v2016_v60 = vmul.f32 %v1985_v43, %v3697_v57  ;;  %v1896_v50 = vrot.slane %v1895_v28, 1  ;;  %v1904_v29 = vrot.slane %v1848_v2, 4  ;;  %v1762_v11 = vshll.u32 %v1761_v33, 16  ;;  %v1795_v26 = vpop.xlane.xlu1 %1794  ;;  %v2601_v58 = vpop.eup %2600 }
 0x4b7   : > { %v1913_v5 = vadd.s32 %v1912_v53, %v1911_v10  ;;  %vm1835_vm14 = vcmp.eq.s32.totalorder %v1775_v54, %v3622_v6  ;;  %v1797_v9 = vcvt.f32.s32 %v1795_v26  ;;  %v1757_v24 = vpop.xlane.xlu0 %1756  ;;  %v1991_v57 = vmul.f32 0.6931472, %v2601_v58 }
 0x4b8   : > { %v4169_v59 = vsel %vm1414_vm4, %v2016_v60, -inf  ;;  %v1905_v27 = vadd.s32 %v1904_v29, %v1848_v2  ;;  %v1851_v35 = vsel %vm1835_vm14, %v3620_v61, 0  ;;  %v1760_v25 = vcvt.f32.s32 %v1757_v24 }
 0x4b9   : > { %2050 = vmax.xlane.f32.xlu0 %v4169_v59  ;;  %v1914_v22 = vrot.slane %v1913_v5, 1  ;;  %v1922_v15 = vrot.slane %v1851_v35, 4  ;;  %v1798_v31 = vshll.u32 %v1797_v9, 16  ;;  %v1972_v38 = vadd.f32 1.0, %v1956_v63 }
 0x4ba   : > { %v1906_v49 = vrot.slane %v1905_v27, 2  ;;  %v1763_v51 = vadd.s32 %v1762_v11, %v1760_v25  ;;  %v1793_v47 = vpop.xlane.xlu1 %1792  ;;  %v2019_v8 = vmul.f32 %v1991_v57, %v3724_v0  ;;  %v1897_v12 = vadd.s32 %v1896_v50, %v1895_v28 }
 0x4bb   : > { %v1923_v41 = vadd.s32 %v1922_v15, %v1851_v35  ;;  %v1796_v23 = vcvt.f32.s32 %v1793_v47  ;;  %v1783_v13 = vpop.xlane.xlu0 %1782  ;;  %2606 = vlog2.f32 %v1972_v38  ;;  %v2603_v14 = vpop.eup %2602  ;;  %v1959_v45 = vcvt.s32.f32 %v1903_v21 }
 0x4bc   : > { %v1907_v1 = vadd.s32 %v1906_v49, %v1905_v27  ;;  %vm1834_vm2 = vcmp.eq.s32.totalorder %v1763_v51, %v3622_v6  ;;  %v1785_v48 = vcvt.f32.s32 %v1783_v13  ;;  %v4177_v55 = vsel %vm1414_vm4, %v2019_v8, -inf }
 0x4bd   : > { %v1924_v42 = vrot.slane %v1923_v41, 2  ;;  %v1850_v4 = vsel %vm1834_vm2, %v3620_v61, 0  ;;  %v1799_v36 = vadd.s32 %v1798_v31, %v1796_v23  ;;  %2056 = vmax.xlane.f32.xlu1 %v4177_v55  ;;  %v1989_v0 = vmul.f32 0.6931472, %v2603_v14 }
 0x4be   : > { %v1908_v56 = vrot.slane %v1907_v1, 1  ;;  %v1916_v34 = vrot.slane %v1850_v4, 4  ;;  %v1786_v10 = vshll.u32 %v1785_v48, 16  ;;  %v1819_v46 = vpop.xlane.xlu1 %1818  ;;  %v1975_v54 = vadd.f32 1.0, %v1959_v45 }
 0x4bf   : > { %v1925_v43 = vadd.s32 %v1924_v42, %v1923_v41  ;;  %vm1837_vm7 = vcmp.eq.s32.totalorder %v1799_v36, %v3622_v6  ;;  %v1821_v62 = vcvt.f32.s32 %v1819_v46  ;;  %v1781_v28 = vpop.xlane.xlu0 %1780  ;;  %v2018_v33 = vmul.f32 %v1989_v0, %v3740_v16 }
 0x4c0   : > { %v1917_v63 = vadd.s32 %v1916_v34, %v1850_v4  ;;  %v1853_v53 = vsel %vm1837_vm7, %v3620_v61, 0  ;;  %v1784_v2 = vcvt.f32.s32 %v1781_v28  ;;  %2608 = vlog2.f32 %v1975_v54 }
 0x4c1   : > { %v1926_v60 = vrot.slane %v1925_v43, 1  ;;  %v1934_v50 = vrot.slane %v1853_v53, 4  ;;  %v1822_v29 = vshll.u32 %v1821_v62, 16  ;;  %v4186_v11 = vsel %vm1414_vm4, %v2018_v33, -inf }
 0x4c2   : > { %v1918_v26 = vrot.slane %v1917_v63, 2  ;;  %v1787_v58 = vadd.s32 %v1786_v10, %v1784_v2  ;;  %2054 = vmax.xlane.f32.xlu0 %v4186_v11  ;;  %v1817_v9 = vpop.xlane.xlu1 %1816  ;;  %v1958_v24 = vcvt.s32.f32 %v1897_v12  ;;  %v2605_v16 = vpop.eup %2604  ;;  %v1915_v57 = vadd.s32 %v1914_v22, %v1913_v5 }
 0x4c3   : > { %v1935_v27 = vadd.s32 %v1934_v50, %v1853_v53  ;;  %v1820_v35 = vcvt.f32.s32 %v1817_v9  ;;  %v1807_v25 = vpop.xlane.xlu0 %1806  ;;  %v1909_v15 = vadd.s32 %v1908_v56, %v1907_v1  ;;  %v1995_v49 = vmul.f32 0.6931472, %v2605_v16 }
 0x4c4   : > { %v1919_v31 = vadd.s32 %v1918_v26, %v1917_v63  ;;  %vm1836_vm10 = vcmp.eq.s32.totalorder %v1787_v58, %v3622_v6  ;;  %v1809_v38 = vcvt.f32.s32 %v1807_v25  ;;  %v1974_v21 = vadd.f32 1.0, %v1958_v24 }
 0x4c5   : > { %v1936_v51 = vrot.slane %v1935_v27, 2  ;;  %v1852_v47 = vsel %vm1836_vm10, %v3620_v61, 0  ;;  %v1823_v8 = vadd.s32 %v1822_v29, %v1820_v35  ;;  %v2021_v12 = vmul.f32 %v1995_v49, %v3772_v18 }
 0x4c6   : > { %v1920_v41 = vrot.slane %v1919_v31, 1  ;;  %v1928_v23 = vrot.slane %v1852_v47, 4  ;;  %v1810_v13 = vshll.u32 %v1809_v38, 16  ;;  %2610 = vlog2.f32 %v1974_v21 }
 0x4c7   : > { %v1937_v14 = vadd.s32 %v1936_v51, %v1935_v27  ;;  %vm1839_vm3 = vcmp.eq.s32.totalorder %v1823_v8, %v3622_v6  ;;  %v1805_v5 = vpop.xlane.xlu0 %1804  ;;  %v1961_v22 = vcvt.s32.f32 %v1915_v57  ;;  %v4196_v4 = vsel %vm1414_vm4, %v2021_v12, -inf }
 0x4c8   : > { %v2607_v1 = vpop.eup %2606  ;;  %v1929_v48 = vadd.s32 %v1928_v23, %v1852_v47  ;;  %v1855_v42 = vsel %vm1839_vm3, %v3620_v61, 0  ;;  %v1808_v36 = vcvt.f32.s32 %v1805_v5  ;;  %2060 = vmax.xlane.f32.xlu1 %v4196_v4  ;;  %v1960_v45 = vcvt.s32.f32 %v1909_v15 }
 0x4c9   : > { %v1938_v0 = vrot.slane %v1937_v14, 1  ;;  %v1946_v56 = vrot.slane %v1855_v42, 4  ;;  %v1993_v18 = vmul.f32 0.6931472, %v2607_v1  ;;  %v1977_v34 = vadd.f32 1.0, %v1961_v22 }
 0x4ca   : > { %v1930_v10 = vrot.slane %v1929_v48, 2  ;;  %v1811_v46 = vadd.s32 %v1810_v13, %v1808_v36  ;;  %v1927_v62 = vadd.s32 %v1926_v60, %v1925_v43  ;;  %v1921_v63 = vadd.s32 %v1920_v41, %v1919_v31 }
 0x4cb   : > { %v1947_v28 = vadd.s32 %v1946_v56, %v1855_v42  ;;  %v2020_v33 = vmul.f32 %v1993_v18, %v3800_v52  ;;  %2612 = vlog2.f32 %v1977_v34  ;;  %v1976_v2 = vadd.f32 1.0, %v1960_v45 }
 0x4cc   : > { %v1931_v53 = vadd.s32 %v1930_v10, %v1929_v48  ;;  %vm1838_vm9 = vcmp.eq.s32.totalorder %v1811_v46, %v3622_v6  ;;  %v1963_v54 = vcvt.s32.f32 %v1927_v62  ;;  %v1962_v58 = vcvt.s32.f32 %v1921_v63 }
 0x4cd   : > { %v1948_v50 = vrot.slane %v1947_v28, 2  ;;  %v1854_v29 = vsel %vm1838_vm9, %v3620_v61, 0  ;;  %v4204_v26 = vsel %vm1414_vm4, %v2020_v33, -inf  ;;  %2614 = vlog2.f32 %v1976_v2  ;;  %v2609_v60 = vpop.eup %2608 }
 0x4ce   : > { %v1932_v9 = vrot.slane %v1931_v53, 1  ;;  %v1940_v43 = vrot.slane %v1854_v29, 4  ;;  %2058 = vmax.xlane.f32.xlu0 %v4204_v26  ;;  %v1979_v52 = vadd.f32 1.0, %v1963_v54  ;;  %v1978_v16 = vadd.f32 1.0, %v1962_v58 }
 0x4cf   : > { %v1949_v24 = vadd.s32 %v1948_v50, %v1947_v28  ;;  %v1939_v27 = vadd.s32 %v1938_v0, %v1937_v14  ;;  %v1999_v25 = vmul.f32 0.6931472, %v2609_v60 }
 0x4d0   : > { %v1941_v35 = vadd.s32 %v1940_v43, %v1854_v29  ;;  %2616 = vlog2.f32 %v1979_v52  ;;  %v1933_v57 = vadd.s32 %v1932_v9, %v1931_v53 }
 0x4d1   : > { %v1950_v61 = vrot.slane %v1949_v24, 1  ;;  %2618 = vlog2.f32 %v1978_v16  ;;  %v1965_v15 = vcvt.s32.f32 %v1939_v27  ;;  %v2023_v38 = vmul.f32 %v1999_v25, %v3802_v44 }
 0x4d2   : > { %v1942_v31 = vrot.slane %v1941_v35, 2  ;;  %v1964_v49 = vcvt.s32.f32 %v1933_v57 }
 0x4d3   : > { %v1981_v51 = vadd.f32 1.0, %v1965_v15  ;;  %v1951_v47 = vadd.s32 %v1950_v61, %v1949_v24  ;;  %v2611_v8 = vpop.eup %2610  ;;  %v4210_v41 = vsel %vm1414_vm4, %v2023_v38, -inf }
 0x4d4   : > { %v1943_v21 = vadd.s32 %v1942_v31, %v1941_v35  ;;  %v1980_v23 = vadd.f32 1.0, %v1964_v49  ;;  %2064 = vmax.xlane.f32.xlu1 %v4210_v41  ;;  %v1997_v13 = vmul.f32 0.6931472, %v2611_v8 }
 0x4d5   : > { %2620 = vlog2.f32 %v1981_v51  ;;  %v1967_v12 = vcvt.s32.f32 %v1951_v47 }
 0x4d6   : > { %v1944_v14 = vrot.slane %v1943_v21, 1  ;;  %2622 = vlog2.f32 %v1980_v23  ;;  %v2022_v5 = vmul.f32 %v1997_v13, %v3851_v37 }
 0x4d7   : > { %v1983_v44 = vadd.f32 1.0, %v1967_v12 }
 0x4d8   : > { %v2613_v22 = vpop.eup %2612  ;;  %v1945_v1 = vadd.s32 %v1944_v14, %v1943_v21  ;;  %v4216_v48 = vsel %vm1414_vm4, %v2022_v5, -inf }
 0x4d9   : > { %v2003_v42 = vmul.f32 0.6931472, %v2613_v22  ;;  %2624 = vlog2.f32 %v1983_v44  ;;  %2062 = vmax.xlane.f32.xlu0 %v4216_v48 }
 0x4da   : > { %v1966_v36 = vcvt.s32.f32 %v1945_v1  ;;  %v2615_v0 = vpop.eup %2614 }
 0x4db   : > { %v2025_v56 = vmul.f32 %v2003_v42, %v3871_v30  ;;  %v2001_v18 = vmul.f32 0.6931472, %v2615_v0 }
 0x4dc   : > { %v1982_v34 = vadd.f32 1.0, %v1966_v36 }
 0x4dd   : > { %v2617_v10 = vpop.eup %2616  ;;  %v4222_v37 = vsel %vm1414_vm4, %v2025_v56, -inf  ;;  %v2024_v45 = vmul.f32 %v2001_v18, %v3906_v3 }
 0x4de   : > { %v2619_v46 = vpop.eup %2618  ;;  %2068 = vmax.xlane.f32.xlu1 %v4222_v37  ;;  %v2007_v62 = vmul.f32 0.6931472, %v2617_v10  ;;  %2626 = vlog2.f32 %v1982_v34 }
 0x4df   : > { %v2005_v28 = vmul.f32 0.6931472, %v2619_v46  ;;  %v4228_v33 = vsel %vm1414_vm4, %v2024_v45, -inf }
 0x4e0   : > { %v2027_v30 = vmul.f32 %v2007_v62, %v3959_v40  ;;  %2066 = vmax.xlane.f32.xlu0 %v4228_v33 }
 0x4e1   : > { %v2026_v63 = vmul.f32 %v2005_v28, %v3998_v17 }
 0x4e2   : > { %v2621_v53 = vpop.eup %2620  ;;  %v4235_v2 = vsel %vm1414_vm4, %v2027_v30, -inf }
 0x4e3   : > { %v2623_v54 = vpop.eup %2622  ;;  %2072 = vmax.xlane.f32.xlu1 %v4235_v2  ;;  %v4240_v3 = vsel %vm1414_vm4, %v2026_v63, -inf  ;;  %v2011_v50 = vmul.f32 0.6931472, %v2621_v53 }
 0x4e4   : > { %v2009_v29 = vmul.f32 0.6931472, %v2623_v54  ;;  %2070 = vmax.xlane.f32.xlu0 %v4240_v3 }
 0x4e5   : > { %v2029_v40 = vmul.f32 %v2011_v50, %v4040_v7 }
 0x4e6   : > { %v2625_v58 = vpop.eup %2624  ;;  %v2028_v17 = vmul.f32 %v2009_v29, %v4071_v19 }
 0x4e7   : > { %v4247_v9 = vsel %vm1414_vm4, %v2029_v40, -inf  ;;  %v2015_v43 = vmul.f32 0.6931472, %v2625_v58 }
 0x4e8   : > { %2076 = vmax.xlane.f32.xlu1 %v4247_v9  ;;  %v4252_v52 = vsel %vm1414_vm4, %v2028_v17, -inf }
 0x4e9   : > { %2074 = vmax.xlane.f32.xlu0 %v4252_v52  ;;  %v2031_v60 = vmul.f32 %v2015_v43, %v4095_v20 }
 0x4eb   : > { %v2627_v24 = vpop.eup %2626  ;;  %v4258_v7 = vsel %vm1414_vm4, %v2031_v60, -inf }
 0x4ec   : > { %2080 = vmax.xlane.f32.xlu1 %v4258_v7  ;;  %v2013_v19 = vmul.f32 0.6931472, %v2627_v24 }
 0x4ee   : > { %v2030_v16 = vmul.f32 %v2013_v19, %v3961_v32 }
 0x4f0   : > { %v4264_v27 = vsel %vm1414_vm4, %v2030_v16, -inf }
 0x4f1   : > { %2078 = vmax.xlane.f32.xlu0 %v4264_v27 }
 0x539   : > { %v2053_v35 = vpop.xlane.xlu1 %2052 }
 0x53a   : > { %v2083_v25 = vsub.f32 %v4160_v39, %v2053_v35 }
 0x53c   : > { %v2100_v20 = vmul.f32 1.442695, %v2083_v25 }
 0x53e   : > { %2628 = vpow2.f32 %v2100_v20 }
 0x542   : > { %v2051_v57 = vpop.xlane.xlu0 %2050 }
 0x543   : > { %v2082_v61 = vsub.f32 %v4169_v59, %v2051_v57 }
 0x545   : > { %v2098_v15 = vmul.f32 1.442695, %v2082_v61 }
 0x546   : > { %v2057_v31 = vpop.xlane.xlu1 %2056 }
 0x547   : > { %2630 = vpow2.f32 %v2098_v15  ;;  %v2085_v38 = vsub.f32 %v4177_v55, %v2057_v31 }
 0x549   : > { %v2104_v32 = vmul.f32 1.442695, %v2085_v38 }
 0x54b   : > { %2632 = vpow2.f32 %v2104_v32  ;;  %v2055_v6 = vpop.xlane.xlu0 %2054  ;;  %v4270_v49 = vpop.eup %2628 }
 0x54c   : > { %v2084_v51 = vsub.f32 %v4186_v11, %v2055_v6  ;;  %2132 = vadd.xlane.f32.xlu1 %v4270_v49 }
 0x54e   : > { %v2102_v39 = vmul.f32 1.442695, %v2084_v51 }
 0x550   : > { %2634 = vpow2.f32 %v2102_v39 }
 0x551   : > { %v2061_v47 = vpop.xlane.xlu1 %2060 }
 0x552   : > { %v2087_v59 = vsub.f32 %v4196_v4, %v2061_v47 }
 0x554   : > { %v4274_v8 = vpop.eup %2630  ;;  %v2108_v21 = vmul.f32 1.442695, %v2087_v59 }
 0x555   : > { %2130 = vadd.xlane.f32.xlu0 %v4274_v8 }
 0x556   : > { %2636 = vpow2.f32 %v2108_v21 }
 0x557   : > { %v2059_v55 = vpop.xlane.xlu0 %2058 }
 0x558   : > { %v4278_v23 = vpop.eup %2632  ;;  %v2086_v13 = vsub.f32 %v4204_v26, %v2059_v55 }
 0x559   : > { %2136 = vadd.xlane.f32.xlu1 %v4278_v23 }
 0x55a   : > { %v2106_v11 = vmul.f32 1.442695, %v2086_v13 }
 0x55c   : > { %2638 = vpow2.f32 %v2106_v11 }
 0x55d   : > { %v4282_v12 = vpop.eup %2634  ;;  %v2065_v14 = vpop.xlane.xlu1 %2064 }
 0x55e   : > { %2134 = vadd.xlane.f32.xlu0 %v4282_v12  ;;  %v2089_v4 = vsub.f32 %v4210_v41, %v2065_v14 }
 0x560   : > { %v2112_v5 = vmul.f32 1.442695, %v2089_v4 }
 0x562   : > { %2640 = vpow2.f32 %v2112_v5  ;;  %v2063_v44 = vpop.xlane.xlu0 %2062 }
 0x563   : > { %v4286_v22 = vpop.eup %2636  ;;  %v2088_v1 = vsub.f32 %v4216_v48, %v2063_v44 }
 0x564   : > { %2140 = vadd.xlane.f32.xlu1 %v4286_v22 }
 0x565   : > { %v2110_v26 = vmul.f32 1.442695, %v2088_v1 }
 0x567   : > { %v2069_v42 = vpop.xlane.xlu1 %2068  ;;  %2642 = vpow2.f32 %v2110_v26 }
 0x568   : > { %v2091_v36 = vsub.f32 %v4222_v37, %v2069_v42 }
 0x569   : > { %v4291_v0 = vpop.eup %2638  ;;  %v2067_v18 = vpop.xlane.xlu0 %2066 }
 0x56a   : > { %v2116_v56 = vmul.f32 1.442695, %v2091_v36  ;;  %2138 = vadd.xlane.f32.xlu0 %v4291_v0  ;;  %v2090_v41 = vsub.f32 %v4228_v33, %v2067_v18 }
 0x56c   : > { %2644 = vpow2.f32 %v2116_v56  ;;  %v2073_v34 = vpop.xlane.xlu1 %2072  ;;  %v2114_v10 = vmul.f32 1.442695, %v2090_v41 }
 0x56d   : > { %v2093_v48 = vsub.f32 %v4235_v2, %v2073_v34  ;;  %v2071_v46 = vpop.xlane.xlu0 %2070 }
 0x56e   : > { %2646 = vpow2.f32 %v2114_v10  ;;  %v2092_v62 = vsub.f32 %v4240_v3, %v2071_v46 }
 0x56f   : > { %v2120_v45 = vmul.f32 1.442695, %v2093_v48  ;;  %v4297_v28 = vpop.eup %2640 }
 0x570   : > { %2144 = vadd.xlane.f32.xlu1 %v4297_v28  ;;  %v2118_v37 = vmul.f32 1.442695, %v2092_v62 }
 0x571   : > { %2648 = vpow2.f32 %v2120_v45  ;;  %v2077_v30 = vpop.xlane.xlu1 %2076 }
 0x572   : > { %v2095_v63 = vsub.f32 %v4247_v9, %v2077_v30  ;;  %v2075_v33 = vpop.xlane.xlu0 %2074  ;;  %2650 = vpow2.f32 %v2118_v37 }
 0x573   : > { %v2094_v53 = vsub.f32 %v4252_v52, %v2075_v33 }
 0x574   : > { %v2124_v54 = vmul.f32 1.442695, %v2095_v63  ;;  %v4302_v2 = vpop.eup %2642 }
 0x575   : > { %v2122_v50 = vmul.f32 1.442695, %v2094_v53  ;;  %v2081_v29 = vpop.xlane.xlu1 %2080  ;;  %2142 = vadd.xlane.f32.xlu0 %v4302_v2 }
 0x576   : > { %2652 = vpow2.f32 %v2124_v54  ;;  %v2097_v3 = vsub.f32 %v4258_v7, %v2081_v29 }
 0x577   : > { %2654 = vpow2.f32 %v2122_v50 }
 0x578   : > { %v2128_v40 = vmul.f32 1.442695, %v2097_v3 }
 0x579   : > { %v4306_v58 = vpop.eup %2644 }
 0x57a   : > { %2148 = vadd.xlane.f32.xlu1 %v4306_v58  ;;  %2656 = vpow2.f32 %v2128_v40  ;;  %v2079_v17 = vpop.xlane.xlu0 %2078 }
 0x57b   : > { %v2096_v9 = vsub.f32 %v4264_v27, %v2079_v17  ;;  %v4310_v43 = vpop.eup %2646 }
 0x57c   : > { %2146 = vadd.xlane.f32.xlu0 %v4310_v43 }
 0x57d   : > { %v2126_v52 = vmul.f32 1.442695, %v2096_v9 }
 0x57e   : > { %v4313_v60 = vpop.eup %2648 }
 0x57f   : > { %2152 = vadd.xlane.f32.xlu1 %v4313_v60  ;;  %2658 = vpow2.f32 %v2126_v52  ;;  %v4316_v24 = vpop.eup %2650 }
 0x580   : > { %2150 = vadd.xlane.f32.xlu0 %v4316_v24 }
 0x583   : > { %v4319_v7 = vpop.eup %2652 }
 0x584   : > { %v4321_v19 = vpop.eup %2654  ;;  %2156 = vadd.xlane.f32.xlu1 %v4319_v7 }
 0x585   : > { %2154 = vadd.xlane.f32.xlu0 %v4321_v19 }
 0x587   : > { %v4325_v16 = vpop.eup %2656 }
 0x588   : > { %2160 = vadd.xlane.f32.xlu1 %v4325_v16 }
 0x58c   : > { %v4328_v27 = vpop.eup %2658 }
 0x58d   : > { %2158 = vadd.xlane.f32.xlu0 %v4328_v27 }
 0x5d5   : > { %v2133_v35 = vpop.xlane.xlu1 %2132 }
 0x5d6   : > { %2660 = vrcp.f32 %v2133_v35 }
 0x5de   : > { %v2131_v25 = vpop.xlane.xlu0 %2130 }
 0x5df   : > { %2662 = vrcp.f32 %v2131_v25 }
 0x5e2   : > { %v2137_v20 = vpop.xlane.xlu1 %2136 }
 0x5e3   : > { %2664 = vrcp.f32 %v2137_v20  ;;  %v2661_v57 = vpop.eup %2660 }
 0x5e4   : > { %v2165_v61 = vmul.f32 %v2661_v57, %v4270_v49 }
 0x5e6   : > { %2195 = vst [vmem:[%s4335_s24 + $0x1] sm:$0x1] %v2165_v61 }
 0x5e7   : > { %v2135_v15 = vpop.xlane.xlu0 %2134 }
 0x5e8   : > { %2666 = vrcp.f32 %v2135_v15 }
 0x5ec   : > { %v2663_v31 = vpop.eup %2662 }
 0x5ed   : > { %v2163_v38 = vmul.f32 %v2663_v31, %v4274_v8  ;;  %v2141_v32 = vpop.xlane.xlu1 %2140 }
 0x5ee   : > { %2668 = vrcp.f32 %v2141_v32 }
 0x5ef   : > { %2194 = vst [vmem:[%s4335_s24] sm:$0x1] %v2163_v38 }
 0x5f0   : > { %v2665_v6 = vpop.eup %2664 }
 0x5f1   : > { %v2169_v51 = vmul.f32 %v2665_v6, %v4278_v23 }
 0x5f3   : > { %2197 = vst [vmem:[%s4335_s24 + $0x3] sm:$0x1] %v2169_v51  ;;  %v2139_v49 = vpop.xlane.xlu0 %2138 }
 0x5f4   : > { %2670 = vrcp.f32 %v2139_v49 }
 0x5f5   : > { %v2667_v39 = vpop.eup %2666 }
 0x5f6   : > { %v2167_v47 = vmul.f32 %v2667_v39, %v4282_v12 }
 0x5f8   : > { %2196 = vst [vmem:[%s4335_s24 + $0x2] sm:$0x1] %v2167_v47 }
 0x5f9   : > { %v2145_v59 = vpop.xlane.xlu1 %2144 }
 0x5fa   : > { %2672 = vrcp.f32 %v2145_v59 }
 0x5fb   : > { %v2669_v21 = vpop.eup %2668 }
 0x5fc   : > { %v2173_v8 = vmul.f32 %v2669_v21, %v4286_v22 }
 0x5fe   : > { %2199 = vst [vmem:[%s4335_s24 + $0x5] sm:$0x1] %v2173_v8  ;;  %v2143_v55 = vpop.xlane.xlu0 %2142 }
 0x5ff   : > { %2674 = vrcp.f32 %v2143_v55 }
 0x601   : > { %v2671_v13 = vpop.eup %2670 }
 0x602   : > { %v2171_v23 = vmul.f32 %v2671_v13, %v4291_v0 }
 0x603   : > { %v2149_v11 = vpop.xlane.xlu1 %2148 }
 0x604   : > { %2198 = vst [vmem:[%s4335_s24 + $0x4] sm:$0x1] %v2171_v23  ;;  %2676 = vrcp.f32 %v2149_v11 }
 0x605   : > { %v2147_v14 = vpop.xlane.xlu0 %2146 }
 0x606   : > { %2678 = vrcp.f32 %v2147_v14 }
 0x607   : > { %v2673_v12 = vpop.eup %2672 }
 0x608   : > { %v2153_v4 = vpop.xlane.xlu1 %2152  ;;  %v2177_v5 = vmul.f32 %v2673_v12, %v4297_v28 }
 0x609   : > { %2680 = vrcp.f32 %v2153_v4  ;;  %v2151_v44 = vpop.xlane.xlu0 %2150 }
 0x60a   : > { %2201 = vst [vmem:[%s4335_s24 + $0x7] sm:$0x1] %v2177_v5  ;;  %2682 = vrcp.f32 %v2151_v44 }
 0x60c   : > { %v2675_v22 = vpop.eup %2674 }
 0x60d   : > { %v2157_v1 = vpop.xlane.xlu1 %2156  ;;  %v2175_v26 = vmul.f32 %v2675_v22, %v4302_v2 }
 0x60e   : > { %2684 = vrcp.f32 %v2157_v1  ;;  %v2155_v42 = vpop.xlane.xlu0 %2154 }
 0x60f   : > { %2686 = vrcp.f32 %v2155_v42  ;;  %2200 = vst [vmem:[%s4335_s24 + $0x6] sm:$0x1] %v2175_v26 }
 0x611   : > { %v2677_v36 = vpop.eup %2676  ;;  %v2161_v0 = vpop.xlane.xlu1 %2160 }
 0x612   : > { %v2181_v56 = vmul.f32 %v2677_v36, %v4306_v58  ;;  %2688 = vrcp.f32 %v2161_v0 }
 0x613   : > { %v2679_v18 = vpop.eup %2678 }
 0x614   : > { %2203 = vst [vmem:[%s4335_s24 + $0x9] sm:$0x1] %v2181_v56  ;;  %v2179_v41 = vmul.f32 %v2679_v18, %v4310_v43 }
 0x616   : > { %v2681_v34 = vpop.eup %2680  ;;  %v2159_v10 = vpop.xlane.xlu0 %2158  ;;  %2202 = vst [vmem:[%s4335_s24 + $0x8] sm:$0x1] %v2179_v41 }
 0x617   : > { %v2185_v48 = vmul.f32 %v2681_v34, %v4313_v60  ;;  %2690 = vrcp.f32 %v2159_v10  ;;  %v2683_v46 = vpop.eup %2682 }
 0x618   : > { %v2183_v45 = vmul.f32 %v2683_v46, %v4316_v24 }
 0x619   : > { %2205 = vst [vmem:[%s4335_s24 + $0xb] sm:$0x1] %v2185_v48 }
 0x61a   : > { %2204 = vst [vmem:[%s4335_s24 + $0xa] sm:$0x1] %v2183_v45 }
 0x61b   : > { %v2685_v62 = vpop.eup %2684 }
 0x61c   : > { %v2687_v28 = vpop.eup %2686  ;;  %v2189_v37 = vmul.f32 %v2685_v62, %v4319_v7 }
 0x61d   : > { %v2187_v30 = vmul.f32 %v2687_v28, %v4321_v19 }
 0x61e   : > { %2207 = vst [vmem:[%s4335_s24 + $0xd] sm:$0x1] %v2189_v37 }
 0x61f   : > { %v2689_v63 = vpop.eup %2688  ;;  %2206 = vst [vmem:[%s4335_s24 + $0xc] sm:$0x1] %v2187_v30 }
 0x620   : > { %v2193_v33 = vmul.f32 %v2689_v63, %v4325_v16 }
 0x622   : > { %2209 = vst [vmem:[%s4335_s24 + $0xf] sm:$0x1] %v2193_v33 }
 0x624   : > { %v2691_v53 = vpop.eup %2690 }
 0x625   : > { %v2191_v54 = vmul.f32 %v2691_v53, %v4328_v27 }
 0x627   : > { %2208 = vst [vmem:[%s4335_s24 + $0xe] sm:$0x1] %v2191_v54 }
 0x628   : > { %2705 = shalt.err (!%p2702_p3)
}
 0x629   : > { %s2706_s19 = scalar_lea.hbm %s4371_s14, 256  ;;  %s2710_s22 = scalar_lea.hbm %s4426_s7, 512 }
 0x62a   : > { %p2707_p4 = scmp.ne.s32.totalorder %s4371_s14, %s2706_s19  ;;  %p2711_p9 = scmp.lt.s32.totalorder %s4371_s14, %s4426_s7 }
 0x62b   : > { %p2712_p10 = scmp.lt.s32.totalorder %s2710_s22, %s2706_s19 }
 0x62c   : > { %p2708_p7 = pnand %p2707_p4, %p2840_p5 }
 0x62d   : > { %p2713_p11 = por %p2712_p10, %p2711_p9 }
 0x62e   : > { %p2709_p8 = pneg %p2708_p7 }
 0x630   : > { %p2714_p12 = pnand %p2713_p11, %p2709_p8 }
 0x632   : > { %2717 = shalt.err (!%p2714_p12)
}
 0x633   : > { %s2757_s25 = smov 16   ;;  %s2758_s9 = smov 1  }
 0x634   : > { %2457 = dma.vmem_to_hbm [thread:$0]  (%p2840_p5), %s4373_s30, 256, %s4371_s14, %s4379_s15, %s2757_s25, %s2757_s25, %s2758_s9  }
 0x635 PF: > { %p2463_p13 = scmp.ge.s32.totalorder %s2752_s29, 2  ;;  %s2239_s10 = sand.u32 1, %s2740_s26  }
 0x636   : > { %s2240_s6 = scalar_lea.sflag [#allocation4], %s2239_s10 }
 0x637   : > { %p2460_p0 = pnand %p2463_p13, %p2844_p6 }
 0x639   : > { %p2461_p1 = pneg %p2460_p0 }
 0x63b   : > { %2735 = dma.done.wait (%p2461_p1), %s2240_s6, 256  }
 0x63c   : > { %2737 = vsyncadd (%p2461_p1), %s2240_s6, 4294967040  ;;  %p18_p2 = scmp.ge.s32.totalorder %s2827_s8, 4   ;;  %s4505_s26 = smov %s2744_s27 }
 0x63d   : > { %s4506_s27 = smov %s2748_s28  ;;  %s4507_s28 = smov %s2838_s11 }
 0x63e   : > { %s4508_s29 = smov %s2827_s8  ;;  %20 = sbr.rel (!%p18_p2) target bundleno = 5 (0x5), region = 83 }
 0x643   :  { %2245 = vsyncpa [#allocation4], 1 }
 0x644   :  { %2247 = vsyncpa [#allocation4 + $0x1], 1 }

</bundles_post_ra>
